<compile_context>
chip_gen: v6e
topology: v6e:2x2x1
jax: 0.10.0
libtpu: 0.0.40
codegen_flags: <defaults>
</compile_context>

<pallas_src>
import functools

import numpy as np
import jax
import jax.numpy as jnp
from jax import lax
from jax.experimental import pallas as pl
from jax.experimental.pallas import tpu as pltpu

EPS = 1e-6          # LayerNorm2d eps in NAFNet
_SLAB = 8           # halo rows are fetched in 8-row slabs (sublane granularity)


# ----------------------------------------------------------------------------
# In-kernel helpers (channels on sublanes, flattened spatial on lanes)
# ----------------------------------------------------------------------------
def _layernorm(x, w, b):
    """LayerNorm over channels (axis 0), single fused pass. x:(C,L), w/b:(C,1)."""
    c = x.shape[0]
    s1 = jnp.sum(x, axis=0, keepdims=True)
    s2 = jnp.sum(x * x, axis=0, keepdims=True)
    mu = s1 * (1.0 / c)
    var = s2 * (1.0 / c) - mu * mu
    return (x - mu) * lax.rsqrt(var + EPS) * w + b


def _conv1x1(x, wb):
    """1x1 conv as unrolled broadcast-MACs on the VPU.
    x: (Cin, L), wb: (Cout, Cin+1) with the bias in the last column."""
    cin = x.shape[0]
    acc = wb[:, cin:cin + 1] + wb[:, 0:1] * x[0:1, :]
    for ci in range(1, cin):
        acc = acc + wb[:, ci:ci + 1] * x[ci:ci + 1, :]
    return acc


# ----------------------------------------------------------------------------
# Pass 1: LN1 -> conv1 -> 3x3 depthwise -> SimpleGate (+ pool partial sums)
# ----------------------------------------------------------------------------
def _pass1_kernel(x_ref, xtop_ref, xbot_ref, mask_ref, misc_ref, w1b_ref,
                  dwp_ref, g_ref, gsum_ref):
    t = pl.program_id(1)
    n_t = pl.num_programs(1)
    _, C, TP = x_ref.shape
    W = xtop_ref.shape[3]
    C2 = w1b_ref.shape[0]

    misc = misc_ref[...]
    n1w, n1b = misc[:, 0:1], misc[:, 1:2]
    w1b = w1b_ref[...]                       # (2C, C+1)
    dwp = dwp_ref[...]                       # (2C, 10): 9 taps + bias
    masks = mask_ref[...]                    # (9, TP) 0/1 border masks

    # LayerNorm1 + conv1 (1x1) on the tile.
    h = _conv1x1(_layernorm(x_ref[0], n1w, n1b), w1b)          # (2C, TP)

    # 3x3 depthwise conv, intra-tile taps: lane rolls (XLU) + border masks.
    acc = dwp[:, 4:5] * h                                      # centre tap init
    for dy in (-1, 0, 1):
        for dx in (-1, 0, 1):
            if dy == 0 and dx == 0:
                continue
            k = (dy + 1) * 3 + (dx + 1)
            d = dy * W + dx
            sh = pltpu.roll(h, (-d) % TP, axis=1)
            acc = acc + dwp[:, k:k + 1] * (sh * masks[k:k + 1, :])

    # Halo rows: recompute LN+conv1 on the single row above / below the tile
    # and add the dy=-1 / dy=+1 taps into the tile's first / last row.
    def _row_taps(xrow, k0):                                   # xrow: (C, W)
        hr = _conv1x1(_layernorm(xrow, n1w, n1b), w1b)         # (2C, W)
        z = jnp.zeros((C2, 1), hr.dtype)
        left = jnp.concatenate([z, hr[:, :W - 1]], axis=1)     # value at col-1
        right = jnp.concatenate([hr[:, 1:], z], axis=1)        # value at col+1
        return (dwp[:, k0:k0 + 1] * left
                + dwp[:, k0 + 1:k0 + 2] * hr
                + dwp[:, k0 + 2:k0 + 3] * right)

    top = _row_taps(xtop_ref[0, :, _SLAB - 1, :], 0)           # taps dy = -1
    top = top * (t > 0).astype(jnp.float32)                    # zero at image top
    bot = _row_taps(xbot_ref[0, :, 0, :], 6)                   # taps dy = +1
    bot = bot * (t < n_t - 1).astype(jnp.float32)              # zero at image bottom
    zpad = jnp.zeros((C2, TP - W), jnp.float32)
    acc = acc + jnp.concatenate([top, zpad], axis=1)
    acc = acc + jnp.concatenate([zpad, bot], axis=1)

    h = acc + dwp[:, 9:10]                                     # conv2 bias

    # SimpleGate.
    g = h[:C, :] * h[C:, :]                                    # (C, TP)
    g_ref[0] = g

    # Partial channel sums for the SCA global average pool (accumulated over t).
    @pl.when(t == 0)
    def _():
        gsum_ref[...] = jnp.zeros_like(gsum_ref)
    gsum_ref[...] += jnp.sum(g, axis=1, keepdims=True)[None]


# ----------------------------------------------------------------------------
# Pass 2: SCA -> conv3 -> residual -> LN2 -> conv4 -> gate -> conv5 -> residual
# ----------------------------------------------------------------------------
def _pass2_kernel(x_ref, g_ref, gsum_ref, misc_ref, wscab_ref, w3b_ref,
                  w4b_ref, w5b_ref, o_ref, *, inv_hw):
    _, C, TP = x_ref.shape
    misc = misc_ref[...]
    n2w, n2b = misc[:, 2:3], misc[:, 3:4]
    beta, gamma = misc[:, 4:5], misc[:, 5:6]

    inp = x_ref[0]                                             # (C, TP)
    g = g_ref[0]                                               # (C, TP)

    # Simplified Channel Attention (pool sums came from pass 1), on the VPU.
    s = _conv1x1(gsum_ref[0] * inv_hw, wscab_ref[...])         # (C, 1)
    y = inp + _conv1x1(g * s, w3b_ref[...]) * beta             # conv3 + residual

    # FFN branch.
    h = _conv1x1(_layernorm(y, n2w, n2b), w4b_ref[...])        # (2C, TP)
    g2 = h[:C, :] * h[C:, :]                                   # SimpleGate
    out = y + _conv1x1(g2, w5b_ref[...]) * gamma
    o_ref[0] = out.astype(o_ref.dtype)


# ----------------------------------------------------------------------------
# Wrapper
# ----------------------------------------------------------------------------
def _pick_tile_h(H, W, c, budget_bytes=2 * 1024 * 1024):
    """Largest lane-dense H-tile (multiple of 8) within a small VMEM budget."""
    per_row = W * 4 * (10 * c)          # rough f32 bytes live per image row
    cands = [th for th in range(_SLAB, H + 1, _SLAB)
             if H % th == 0 and ((th * W) % 128 == 0 or th == H)]
    if not cands:
        return H
    fit = [th for th in cands if th * per_row <= budget_bytes]
    return max(fit) if fit else min(cands)


@functools.partial(jax.jit, static_argnames=("tile_h",))
def nafblock_forward(x, params, tile_h=None):
    N, C, H, W = x.shape
    C2 = 2 * C
    if tile_h is None:
        tile_h = _pick_tile_h(H, W, C)
    assert H % _SLAB == 0, "H must be a multiple of 8"
    assert H % tile_h == 0 and tile_h % _SLAB == 0
    assert (tile_h * W) % 128 == 0 or tile_h == H, "tile must be lane-dense"
    TH, nT = tile_h, H // tile_h
    TP, P = tile_h * W, H * W
    r = TH // _SLAB

    # ---- pack small params (fewer DMA descriptors / VMEM tiles) ------------
    pk = params
    misc = jnp.stack([pk["n1w"], pk["n1b"], pk["n2w"], pk["n2b"],
                      pk["beta"], pk["gamma"]], axis=1)             # (C, 6)
    w1b = jnp.concatenate([pk["w1"], pk["b1"][:, None]], axis=1)    # (2C, C+1)
    dwp = jnp.concatenate([pk["w2"].reshape(C2, 9),
                           pk["b2"][:, None]], axis=1)              # (2C, 10)
    wscab = jnp.concatenate([pk["wsca"], pk["bsca"][:, None]], axis=1)
    w3b = jnp.concatenate([pk["w3"], pk["b3"][:, None]], axis=1)
    w4b = jnp.concatenate([pk["w4"], pk["b4"][:, None]], axis=1)
    w5b = jnp.concatenate([pk["w5"], pk["b5"][:, None]], axis=1)

    # ---- static border masks for the 9 depthwise taps (tile-local rows) ----
    li = np.arange(TP)
    row, col = li // W, li % W
    m = np.ones((9, TP), np.float32)
    for dy in (-1, 0, 1):
        for dx in (-1, 0, 1):
            k = (dy + 1) * 3 + (dx + 1)
            ok = ((row + dy >= 0) & (row + dy < TH)
                  & (col + dx >= 0) & (col + dx < W))
            m[k] = ok.astype(np.float32)
    masks = jnp.asarray(m)

    x3 = x.reshape(N, C, P)          # flattened spatial axis on lanes (no copy)
    vlim = 32 * 1024 * 1024

    # ---------------- pass 1 ------------------------------------------------
    g, gsum = pl.pallas_call(
        _pass1_kernel,
        out_shape=(jax.ShapeDtypeStruct((N, C, P), jnp.float32),
                   jax.ShapeDtypeStruct((N, C, 1), jnp.float32)),
        grid_spec=pltpu.PrefetchScalarGridSpec(
            num_scalar_prefetch=0,
            grid=(N, nT),
            in_specs=[
                pl.BlockSpec((1, C, TP), lambda n, t: (n, 0, t)),
                pl.BlockSpec((1, C, _SLAB, W),
                             lambda n, t: (n, 0, jnp.maximum(t * r - 1, 0), 0)),
                pl.BlockSpec((1, C, _SLAB, W),
                             lambda n, t: (n, 0,
                                           jnp.minimum((t + 1) * r,
                                                       H // _SLAB - 1), 0)),
                pl.BlockSpec((9, TP), lambda n, t: (0, 0)),
                pl.BlockSpec((C, 6), lambda n, t: (0, 0)),
                pl.BlockSpec((C2, C + 1), lambda n, t: (0, 0)),
                pl.BlockSpec((C2, 10), lambda n, t: (0, 0)),
            ],
            out_specs=(pl.BlockSpec((1, C, TP), lambda n, t: (n, 0, t)),
                       pl.BlockSpec((1, C, 1), lambda n, t: (n, 0, 0))),
        ),
        compiler_params=pltpu.CompilerParams(
            dimension_semantics=("parallel", "arbitrary"),
            vmem_limit_bytes=vlim),
    )(x3, x, x, masks, misc, w1b, dwp)

    # ---------------- pass 2 ------------------------------------------------
    out = pl.pallas_call(
        functools.partial(_pass2_kernel, inv_hw=1.0 / P),
        out_shape=jax.ShapeDtypeStruct((N, C, P), x.dtype),
        grid_spec=pltpu.PrefetchScalarGridSpec(
            num_scalar_prefetch=0,
            grid=(N, nT),
            in_specs=[
                pl.BlockSpec((1, C, TP), lambda n, t: (n, 0, t)),
                pl.BlockSpec((1, C, TP), lambda n, t: (n, 0, t)),
                pl.BlockSpec((1, C, 1), lambda n, t: (n, 0, 0)),
                pl.BlockSpec((C, 6), lambda n, t: (0, 0)),
                pl.BlockSpec((C, C + 1), lambda n, t: (0, 0)),
                pl.BlockSpec((C, C + 1), lambda n, t: (0, 0)),
                pl.BlockSpec((C2, C + 1), lambda n, t: (0, 0)),
                pl.BlockSpec((C, C + 1), lambda n, t: (0, 0)),
            ],
            out_specs=pl.BlockSpec((1, C, TP), lambda n, t: (n, 0, t)),
        ),
        compiler_params=pltpu.CompilerParams(
            dimension_semantics=("parallel", "parallel"),
            vmem_limit_bytes=vlim),
    )(x3, g, gsum, misc, wscab, w3b, w4b, w5b)
    return out.reshape(N, C, H, W)


# ----------------------------------------------------------------------------
# Parameter init (synthetic, torch-like layouts: (out, in) for 1x1 convs,
# (2C, 3, 3) for the depthwise conv).  PyTorch inits beta/gamma to zeros;
# here they are small random values so the full data path is exercised.
# ----------------------------------------------------------------------------
def init_params(c, key):
    c2 = 2 * c
    ks = jax.random.split(key, 14)

    def nrm(k, shape, scale=0.1):
        return scale * jax.random.normal(k, shape, jnp.float32)

    return {
        "n1w": jnp.ones((c,), jnp.float32),
        "n1b": jnp.zeros((c,), jnp.float32),
        "w1": nrm(ks[0], (c2, c)),
        "b1": nrm(ks[1], (c2,), 0.01),
        "w2": nrm(ks[2], (c2, 3, 3)),
        "b2": nrm(ks[3], (c2,), 0.01),
        "wsca": nrm(ks[4], (c, c)),
        "bsca": nrm(ks[5], (c,), 0.01),
        "w3": nrm(ks[6], (c, c)),
        "b3": nrm(ks[7], (c,), 0.01),
        "n2w": jnp.ones((c,), jnp.float32),
        "n2b": jnp.zeros((c,), jnp.float32),
        "w4": nrm(ks[8], (c2, c)),
        "b4": nrm(ks[9], (c2,), 0.01),
        "w5": nrm(ks[10], (c, c)),
        "b5": nrm(ks[11], (c,), 0.01),
        "beta": nrm(ks[12], (c,)),
        "gamma": nrm(ks[13], (c,)),
    }


# ----------------------------------------------------------------------------
# Pure-JAX reference (independent formulation, torch-layout weights)
# ----------------------------------------------------------------------------
def nafblock_ref(x, p):
    N, C, H, W = x.shape

    def ln(v, w, b):
        mu = jnp.mean(v, axis=1, keepdims=True)
        var = jnp.mean((v - mu) ** 2, axis=1, keepdims=True)
        return ((v - mu) / jnp.sqrt(var + EPS) * w[None, :, None, None]
                + b[None, :, None, None])

    def conv1x1(v, w, b):
        return jnp.einsum("nchw,oc->nohw", v, w) + b[None, :, None, None]

    inp = x
    u = ln(x, p["n1w"], p["n1b"])
    u = conv1x1(u, p["w1"], p["b1"])
    C2 = u.shape[1]
    k = jnp.transpose(p["w2"], (1, 2, 0))[:, :, None, :]        # (3,3,1,2C) HWIO
    u = lax.conv_general_dilated(
        u, k, window_strides=(1, 1), padding="SAME",
        dimension_numbers=("NCHW", "HWIO", "NCHW"),
        feature_group_count=C2) + p["b2"][None, :, None, None]
    g = u[:, :C] * u[:, C:]
    s = jnp.mean(g, axis=(2, 3))                                # (N, C)
    s = s @ p["wsca"].T + p["bsca"]
    g = g * s[:, :, None, None]
    u = conv1x1(g, p["w3"], p["b3"])
    y = inp + u * p["beta"][None, :, None, None]
    v = conv1x1(ln(y, p["n2w"], p["n2b"]), p["w4"], p["b4"])
    v = v[:, :C] * v[:, C:]
    v = conv1x1(v, p["w5"], p["b5"])
    return y + v * p["gamma"][None, :, None, None]


if __name__ == "__main__":
    key = jax.random.PRNGKey(0)
    kx, kp = jax.random.split(key)

    N, C, H, W = 2, 4, 16, 16
    x = jax.random.normal(kx, (N, C, H, W), jnp.float32)
    params = init_params(C, kp)

    ref = nafblock_ref(x, params)

    # tiled path (2 spatial tiles per image -> halo logic exercised)
    out = jax.block_until_ready(nafblock_forward(x, params, tile_h=8))
    assert out.shape == (N, C, H, W)
    err = float(jnp.max(jnp.abs(out - ref)))
    assert err < 2e-4, f"max abs error (tile_h=8): {err}"

    # default tile choice (single tile per image)
    out2 = jax.block_until_ready(nafblock_forward(x, params))
    err2 = float(jnp.max(jnp.abs(out2 - ref)))
    assert err2 < 2e-4, f"max abs error (default tile): {err2}"

    print("KERNEL_OK")
</pallas_src>

<mosaic_0001>
module attributes {stable_mosaic.version = 11 : i64} {
  func.func @_pass2_kernel(%arg0: i32, %arg1: i32, %arg2: memref<1x4x128xf32, #tpu.memory_space<vmem>>, %arg3: memref<1x4x128xf32, #tpu.memory_space<vmem>>, %arg4: memref<1x4x1xf32, #tpu.memory_space<vmem>>, %arg5: memref<4x6xf32, #tpu.memory_space<vmem>>, %arg6: memref<4x5xf32, #tpu.memory_space<vmem>>, %arg7: memref<4x5xf32, #tpu.memory_space<vmem>>, %arg8: memref<8x5xf32, #tpu.memory_space<vmem>>, %arg9: memref<4x5xf32, #tpu.memory_space<vmem>>, %arg10: memref<1x4x128xf32, #tpu.memory_space<vmem>>) attributes {dimension_semantics = [#tpu.dimension_semantics<parallel>, #tpu.dimension_semantics<parallel>], iteration_bounds = array<i64: 2, 2>, scalar_prefetch = 0 : i64, scratch_operands = 0 : i64, tpu.core_type = #tpu.core_type<tc>, window_params = [{transform_indices = @transform_0, window_bounds = array<i64: 1, 4, 128>}, {transform_indices = @transform_1, window_bounds = array<i64: 1, 4, 128>}, {transform_indices = @transform_2, window_bounds = array<i64: 1, 4, 1>}, {pipeline_mode = #tpu.pipeline_mode<synchronous>, transform_indices = @transform_3, window_bounds = array<i64: 4, 6>}, {pipeline_mode = #tpu.pipeline_mode<synchronous>, transform_indices = @transform_4, window_bounds = array<i64: 4, 5>}, {pipeline_mode = #tpu.pipeline_mode<synchronous>, transform_indices = @transform_5, window_bounds = array<i64: 4, 5>}, {pipeline_mode = #tpu.pipeline_mode<synchronous>, transform_indices = @transform_6, window_bounds = array<i64: 8, 5>}, {pipeline_mode = #tpu.pipeline_mode<synchronous>, transform_indices = @transform_7, window_bounds = array<i64: 4, 5>}, {transform_indices = @transform_8, window_bounds = array<i64: 1, 4, 128>}]} {
    %c0 = arith.constant 0 : index
    %c0_0 = arith.constant 0 : index
    %0 = vector.load %arg5[%c0, %c0_0] : memref<4x6xf32, #tpu.memory_space<vmem>>, vector<4x6xf32>
    %1 = vector.extract_strided_slice %0 {offsets = [0, 2], sizes = [4, 1], strides = [1, 1]} : vector<4x6xf32> to vector<4x1xf32>
    %2 = vector.extract_strided_slice %0 {offsets = [0, 3], sizes = [4, 1], strides = [1, 1]} : vector<4x6xf32> to vector<4x1xf32>
    %3 = vector.extract_strided_slice %0 {offsets = [0, 4], sizes = [4, 1], strides = [1, 1]} : vector<4x6xf32> to vector<4x1xf32>
    %4 = vector.extract_strided_slice %0 {offsets = [0, 5], sizes = [4, 1], strides = [1, 1]} : vector<4x6xf32> to vector<4x1xf32>
    %c0_1 = arith.constant 0 : index
    %c0_2 = arith.constant 0 : index
    %c0_3 = arith.constant 0 : index
    %5 = vector.load %arg2[%c0_1, %c0_2, %c0_3] : memref<1x4x128xf32, #tpu.memory_space<vmem>>, vector<1x4x128xf32>
    %6 = vector.shape_cast %5 : vector<1x4x128xf32> to vector<4x128xf32>
    %c0_4 = arith.constant 0 : index
    %c0_5 = arith.constant 0 : index
    %c0_6 = arith.constant 0 : index
    %7 = vector.load %arg3[%c0_4, %c0_5, %c0_6] : memref<1x4x128xf32, #tpu.memory_space<vmem>>, vector<1x4x128xf32>
    %8 = vector.shape_cast %7 : vector<1x4x128xf32> to vector<4x128xf32>
    %c0_7 = arith.constant 0 : index
    %c0_8 = arith.constant 0 : index
    %c0_9 = arith.constant 0 : index
    %9 = vector.load %arg4[%c0_7, %c0_8, %c0_9] : memref<1x4x1xf32, #tpu.memory_space<vmem>>, vector<1x4x1xf32>
    %10 = vector.shape_cast %9 : vector<1x4x1xf32> to vector<4x1xf32>
    %cst = arith.constant 3.906250e-03 : f32
    %11 = vector.broadcast %cst : f32 to vector<4x1xf32>
    %12 = arith.mulf %10, %11 : vector<4x1xf32>
    %c0_10 = arith.constant 0 : index
    %c0_11 = arith.constant 0 : index
    %13 = vector.load %arg6[%c0_10, %c0_11] : memref<4x5xf32, #tpu.memory_space<vmem>>, vector<4x5xf32>
    %14 = vector.extract_strided_slice %13 {offsets = [0, 4], sizes = [4, 1], strides = [1, 1]} : vector<4x5xf32> to vector<4x1xf32>
    %15 = vector.extract_strided_slice %13 {offsets = [0, 0], sizes = [4, 1], strides = [1, 1]} : vector<4x5xf32> to vector<4x1xf32>
    %16 = vector.extract_strided_slice %12 {offsets = [0, 0], sizes = [1, 1], strides = [1, 1]} : vector<4x1xf32> to vector<1x1xf32>
    %17 = vector.broadcast %16 : vector<1x1xf32> to vector<4x1xf32>
    %18 = arith.mulf %15, %17 : vector<4x1xf32>
    %19 = arith.addf %14, %18 : vector<4x1xf32>
    %20 = vector.extract_strided_slice %13 {offsets = [0, 1], sizes = [4, 1], strides = [1, 1]} : vector<4x5xf32> to vector<4x1xf32>
    %21 = vector.extract_strided_slice %12 {offsets = [1, 0], sizes = [1, 1], strides = [1, 1]} : vector<4x1xf32> to vector<1x1xf32>
    %22 = vector.broadcast %21 : vector<1x1xf32> to vector<4x1xf32>
    %23 = arith.mulf %20, %22 : vector<4x1xf32>
    %24 = arith.addf %19, %23 : vector<4x1xf32>
    %25 = vector.extract_strided_slice %13 {offsets = [0, 2], sizes = [4, 1], strides = [1, 1]} : vector<4x5xf32> to vector<4x1xf32>
    %26 = vector.extract_strided_slice %12 {offsets = [2, 0], sizes = [1, 1], strides = [1, 1]} : vector<4x1xf32> to vector<1x1xf32>
    %27 = vector.broadcast %26 : vector<1x1xf32> to vector<4x1xf32>
    %28 = arith.mulf %25, %27 : vector<4x1xf32>
    %29 = arith.addf %24, %28 : vector<4x1xf32>
    %30 = vector.extract_strided_slice %13 {offsets = [0, 3], sizes = [4, 1], strides = [1, 1]} : vector<4x5xf32> to vector<4x1xf32>
    %31 = vector.extract_strided_slice %12 {offsets = [3, 0], sizes = [1, 1], strides = [1, 1]} : vector<4x1xf32> to vector<1x1xf32>
    %32 = vector.broadcast %31 : vector<1x1xf32> to vector<4x1xf32>
    %33 = arith.mulf %30, %32 : vector<4x1xf32>
    %34 = arith.addf %29, %33 : vector<4x1xf32>
    %35 = vector.broadcast %34 : vector<4x1xf32> to vector<4x128xf32>
    %36 = arith.mulf %8, %35 : vector<4x128xf32>
    %c0_12 = arith.constant 0 : index
    %c0_13 = arith.constant 0 : index
    %37 = vector.load %arg7[%c0_12, %c0_13] : memref<4x5xf32, #tpu.memory_space<vmem>>, vector<4x5xf32>
    %38 = vector.extract_strided_slice %37 {offsets = [0, 4], sizes = [4, 1], strides = [1, 1]} : vector<4x5xf32> to vector<4x1xf32>
    %39 = vector.extract_strided_slice %37 {offsets = [0, 0], sizes = [4, 1], strides = [1, 1]} : vector<4x5xf32> to vector<4x1xf32>
    %40 = vector.extract_strided_slice %36 {offsets = [0, 0], sizes = [1, 128], strides = [1, 1]} : vector<4x128xf32> to vector<1x128xf32>
    %41 = vector.broadcast %39 : vector<4x1xf32> to vector<4x128xf32>
    %42 = vector.broadcast %40 : vector<1x128xf32> to vector<4x128xf32>
    %43 = arith.mulf %41, %42 : vector<4x128xf32>
    %44 = vector.broadcast %38 : vector<4x1xf32> to vector<4x128xf32>
    %45 = arith.addf %44, %43 : vector<4x128xf32>
    %46 = vector.extract_strided_slice %37 {offsets = [0, 1], sizes = [4, 1], strides = [1, 1]} : vector<4x5xf32> to vector<4x1xf32>
    %47 = vector.extract_strided_slice %36 {offsets = [1, 0], sizes = [1, 128], strides = [1, 1]} : vector<4x128xf32> to vector<1x128xf32>
    %48 = vector.broadcast %46 : vector<4x1xf32> to vector<4x128xf32>
    %49 = vector.broadcast %47 : vector<1x128xf32> to vector<4x128xf32>
    %50 = arith.mulf %48, %49 : vector<4x128xf32>
    %51 = arith.addf %45, %50 : vector<4x128xf32>
    %52 = vector.extract_strided_slice %37 {offsets = [0, 2], sizes = [4, 1], strides = [1, 1]} : vector<4x5xf32> to vector<4x1xf32>
    %53 = vector.extract_strided_slice %36 {offsets = [2, 0], sizes = [1, 128], strides = [1, 1]} : vector<4x128xf32> to vector<1x128xf32>
    %54 = vector.broadcast %52 : vector<4x1xf32> to vector<4x128xf32>
    %55 = vector.broadcast %53 : vector<1x128xf32> to vector<4x128xf32>
    %56 = arith.mulf %54, %55 : vector<4x128xf32>
    %57 = arith.addf %51, %56 : vector<4x128xf32>
    %58 = vector.extract_strided_slice %37 {offsets = [0, 3], sizes = [4, 1], strides = [1, 1]} : vector<4x5xf32> to vector<4x1xf32>
    %59 = vector.extract_strided_slice %36 {offsets = [3, 0], sizes = [1, 128], strides = [1, 1]} : vector<4x128xf32> to vector<1x128xf32>
    %60 = vector.broadcast %58 : vector<4x1xf32> to vector<4x128xf32>
    %61 = vector.broadcast %59 : vector<1x128xf32> to vector<4x128xf32>
    %62 = arith.mulf %60, %61 : vector<4x128xf32>
    %63 = arith.addf %57, %62 : vector<4x128xf32>
    %64 = vector.broadcast %3 : vector<4x1xf32> to vector<4x128xf32>
    %65 = arith.mulf %63, %64 : vector<4x128xf32>
    %66 = arith.addf %6, %65 : vector<4x128xf32>
    %cst_14 = arith.constant dense<0.000000e+00> : vector<128xf32>
    %67 = vector.multi_reduction <add>, %66, %cst_14 [0] : vector<4x128xf32> to vector<128xf32>
    %68 = vector.shape_cast %67 : vector<128xf32> to vector<1x128xf32>
    %69 = arith.mulf %66, %66 : vector<4x128xf32>
    %cst_15 = arith.constant dense<0.000000e+00> : vector<128xf32>
    %70 = vector.multi_reduction <add>, %69, %cst_15 [0] : vector<4x128xf32> to vector<128xf32>
    %71 = vector.shape_cast %70 : vector<128xf32> to vector<1x128xf32>
    %cst_16 = arith.constant 2.500000e-01 : f32
    %72 = vector.broadcast %cst_16 : f32 to vector<1x128xf32>
    %73 = arith.mulf %68, %72 : vector<1x128xf32>
    %cst_17 = arith.constant 2.500000e-01 : f32
    %74 = vector.broadcast %cst_17 : f32 to vector<1x128xf32>
    %75 = arith.mulf %71, %74 : vector<1x128xf32>
    %76 = arith.mulf %73, %73 : vector<1x128xf32>
    %77 = arith.subf %75, %76 : vector<1x128xf32>
    %78 = vector.broadcast %73 : vector<1x128xf32> to vector<4x128xf32>
    %79 = arith.subf %66, %78 : vector<4x128xf32>
    %cst_18 = arith.constant 9.99999997E-7 : f32
    %80 = vector.broadcast %cst_18 : f32 to vector<1x128xf32>
    %81 = arith.addf %77, %80 : vector<1x128xf32>
    %82 = math.rsqrt %81 : vector<1x128xf32>
    %83 = vector.broadcast %82 : vector<1x128xf32> to vector<4x128xf32>
    %84 = arith.mulf %79, %83 : vector<4x128xf32>
    %85 = vector.broadcast %1 : vector<4x1xf32> to vector<4x128xf32>
    %86 = arith.mulf %84, %85 : vector<4x128xf32>
    %87 = vector.broadcast %2 : vector<4x1xf32> to vector<4x128xf32>
    %88 = arith.addf %86, %87 : vector<4x128xf32>
    %c0_19 = arith.constant 0 : index
    %c0_20 = arith.constant 0 : index
    %89 = vector.load %arg8[%c0_19, %c0_20] : memref<8x5xf32, #tpu.memory_space<vmem>>, vector<8x5xf32>
    %90 = vector.extract_strided_slice %89 {offsets = [0, 4], sizes = [8, 1], strides = [1, 1]} : vector<8x5xf32> to vector<8x1xf32>
    %91 = vector.extract_strided_slice %89 {offsets = [0, 0], sizes = [8, 1], strides = [1, 1]} : vector<8x5xf32> to vector<8x1xf32>
    %92 = vector.extract_strided_slice %88 {offsets = [0, 0], sizes = [1, 128], strides = [1, 1]} : vector<4x128xf32> to vector<1x128xf32>
    %93 = vector.broadcast %91 : vector<8x1xf32> to vector<8x128xf32>
    %94 = vector.broadcast %92 : vector<1x128xf32> to vector<8x128xf32>
    %95 = arith.mulf %93, %94 : vector<8x128xf32>
    %96 = vector.broadcast %90 : vector<8x1xf32> to vector<8x128xf32>
    %97 = arith.addf %96, %95 : vector<8x128xf32>
    %98 = vector.extract_strided_slice %89 {offsets = [0, 1], sizes = [8, 1], strides = [1, 1]} : vector<8x5xf32> to vector<8x1xf32>
    %99 = vector.extract_strided_slice %88 {offsets = [1, 0], sizes = [1, 128], strides = [1, 1]} : vector<4x128xf32> to vector<1x128xf32>
    %100 = vector.broadcast %98 : vector<8x1xf32> to vector<8x128xf32>
    %101 = vector.broadcast %99 : vector<1x128xf32> to vector<8x128xf32>
    %102 = arith.mulf %100, %101 : vector<8x128xf32>
    %103 = arith.addf %97, %102 : vector<8x128xf32>
    %104 = vector.extract_strided_slice %89 {offsets = [0, 2], sizes = [8, 1], strides = [1, 1]} : vector<8x5xf32> to vector<8x1xf32>
    %105 = vector.extract_strided_slice %88 {offsets = [2, 0], sizes = [1, 128], strides = [1, 1]} : vector<4x128xf32> to vector<1x128xf32>
    %106 = vector.broadcast %104 : vector<8x1xf32> to vector<8x128xf32>
    %107 = vector.broadcast %105 : vector<1x128xf32> to vector<8x128xf32>
    %108 = arith.mulf %106, %107 : vector<8x128xf32>
    %109 = arith.addf %103, %108 : vector<8x128xf32>
    %110 = vector.extract_strided_slice %89 {offsets = [0, 3], sizes = [8, 1], strides = [1, 1]} : vector<8x5xf32> to vector<8x1xf32>
    %111 = vector.extract_strided_slice %88 {offsets = [3, 0], sizes = [1, 128], strides = [1, 1]} : vector<4x128xf32> to vector<1x128xf32>
    %112 = vector.broadcast %110 : vector<8x1xf32> to vector<8x128xf32>
    %113 = vector.broadcast %111 : vector<1x128xf32> to vector<8x128xf32>
    %114 = arith.mulf %112, %113 : vector<8x128xf32>
    %115 = arith.addf %109, %114 : vector<8x128xf32>
    %116 = vector.extract_strided_slice %115 {offsets = [0, 0], sizes = [4, 128], strides = [1, 1]} : vector<8x128xf32> to vector<4x128xf32>
    %117 = vector.extract_strided_slice %115 {offsets = [4, 0], sizes = [4, 128], strides = [1, 1]} : vector<8x128xf32> to vector<4x128xf32>
    %118 = arith.mulf %116, %117 : vector<4x128xf32>
    %c0_21 = arith.constant 0 : index
    %c0_22 = arith.constant 0 : index
    %119 = vector.load %arg9[%c0_21, %c0_22] : memref<4x5xf32, #tpu.memory_space<vmem>>, vector<4x5xf32>
    %120 = vector.extract_strided_slice %119 {offsets = [0, 4], sizes = [4, 1], strides = [1, 1]} : vector<4x5xf32> to vector<4x1xf32>
    %121 = vector.extract_strided_slice %119 {offsets = [0, 0], sizes = [4, 1], strides = [1, 1]} : vector<4x5xf32> to vector<4x1xf32>
    %122 = vector.extract_strided_slice %118 {offsets = [0, 0], sizes = [1, 128], strides = [1, 1]} : vector<4x128xf32> to vector<1x128xf32>
    %123 = vector.broadcast %121 : vector<4x1xf32> to vector<4x128xf32>
    %124 = vector.broadcast %122 : vector<1x128xf32> to vector<4x128xf32>
    %125 = arith.mulf %123, %124 : vector<4x128xf32>
    %126 = vector.broadcast %120 : vector<4x1xf32> to vector<4x128xf32>
    %127 = arith.addf %126, %125 : vector<4x128xf32>
    %128 = vector.extract_strided_slice %119 {offsets = [0, 1], sizes = [4, 1], strides = [1, 1]} : vector<4x5xf32> to vector<4x1xf32>
    %129 = vector.extract_strided_slice %118 {offsets = [1, 0], sizes = [1, 128], strides = [1, 1]} : vector<4x128xf32> to vector<1x128xf32>
    %130 = vector.broadcast %128 : vector<4x1xf32> to vector<4x128xf32>
    %131 = vector.broadcast %129 : vector<1x128xf32> to vector<4x128xf32>
    %132 = arith.mulf %130, %131 : vector<4x128xf32>
    %133 = arith.addf %127, %132 : vector<4x128xf32>
    %134 = vector.extract_strided_slice %119 {offsets = [0, 2], sizes = [4, 1], strides = [1, 1]} : vector<4x5xf32> to vector<4x1xf32>
    %135 = vector.extract_strided_slice %118 {offsets = [2, 0], sizes = [1, 128], strides = [1, 1]} : vector<4x128xf32> to vector<1x128xf32>
    %136 = vector.broadcast %134 : vector<4x1xf32> to vector<4x128xf32>
    %137 = vector.broadcast %135 : vector<1x128xf32> to vector<4x128xf32>
    %138 = arith.mulf %136, %137 : vector<4x128xf32>
    %139 = arith.addf %133, %138 : vector<4x128xf32>
    %140 = vector.extract_strided_slice %119 {offsets = [0, 3], sizes = [4, 1], strides = [1, 1]} : vector<4x5xf32> to vector<4x1xf32>
    %141 = vector.extract_strided_slice %118 {offsets = [3, 0], sizes = [1, 128], strides = [1, 1]} : vector<4x128xf32> to vector<1x128xf32>
    %142 = vector.broadcast %140 : vector<4x1xf32> to vector<4x128xf32>
    %143 = vector.broadcast %141 : vector<1x128xf32> to vector<4x128xf32>
    %144 = arith.mulf %142, %143 : vector<4x128xf32>
    %145 = arith.addf %139, %144 : vector<4x128xf32>
    %146 = vector.broadcast %4 : vector<4x1xf32> to vector<4x128xf32>
    %147 = arith.mulf %145, %146 : vector<4x128xf32>
    %148 = arith.addf %66, %147 : vector<4x128xf32>
    %c0_23 = arith.constant 0 : index
    %c0_24 = arith.constant 0 : index
    %c0_25 = arith.constant 0 : index
    %149 = vector.load %arg10[%c0_23, %c0_24, %c0_25] : memref<1x4x128xf32, #tpu.memory_space<vmem>>, vector<1x4x128xf32>
    %150 = vector.shape_cast %149 : vector<1x4x128xf32> to vector<4x128xf32>
    %151 = vector.shape_cast %148 : vector<4x128xf32> to vector<1x4x128xf32>
    tpu.vector_store %arg10[%c0_23, %c0_24, %c0_25], %151 {strides = array<i32>} : memref<1x4x128xf32, #tpu.memory_space<vmem>>, vector<1x4x128xf32>,
    return
  }
  func.func @transform_0(%arg0: i32, %arg1: i32) -> (i32, i32, i32) {
    %c0_i32 = arith.constant 0 : i32
    %c0_i32_0 = arith.constant 0 : i32
    return %arg0, %c0_i32, %arg1 : i32, i32, i32
  }
  func.func @transform_1(%arg0: i32, %arg1: i32) -> (i32, i32, i32) {
    %c0_i32 = arith.constant 0 : i32
    %c0_i32_0 = arith.constant 0 : i32
    return %arg0, %c0_i32, %arg1 : i32, i32, i32
  }
  func.func @transform_2(%arg0: i32, %arg1: i32) -> (i32, i32, i32) {
    %c0_i32 = arith.constant 0 : i32
    %c0_i32_0 = arith.constant 0 : i32
    %c0_i32_1 = arith.constant 0 : i32
    return %arg0, %c0_i32, %c0_i32_0 : i32, i32, i32
  }
  func.func @transform_3(%arg0: i32, %arg1: i32) -> (i32, i32) {
    %c0_i32 = arith.constant 0 : i32
    %c0_i32_0 = arith.constant 0 : i32
    %c0_i32_1 = arith.constant 0 : i32
    return %c0_i32, %c0_i32_0 : i32, i32
  }
  func.func @transform_4(%arg0: i32, %arg1: i32) -> (i32, i32) {
    %c0_i32 = arith.constant 0 : i32
    %c0_i32_0 = arith.constant 0 : i32
    %c0_i32_1 = arith.constant 0 : i32
    return %c0_i32, %c0_i32_0 : i32, i32
  }
  func.func @transform_5(%arg0: i32, %arg1: i32) -> (i32, i32) {
    %c0_i32 = arith.constant 0 : i32
    %c0_i32_0 = arith.constant 0 : i32
    %c0_i32_1 = arith.constant 0 : i32
    return %c0_i32, %c0_i32_0 : i32, i32
  }
  func.func @transform_6(%arg0: i32, %arg1: i32) -> (i32, i32) {
    %c0_i32 = arith.constant 0 : i32
    %c0_i32_0 = arith.constant 0 : i32
    %c0_i32_1 = arith.constant 0 : i32
    return %c0_i32, %c0_i32_0 : i32, i32
  }
  func.func @transform_7(%arg0: i32, %arg1: i32) -> (i32, i32) {
    %c0_i32 = arith.constant 0 : i32
    %c0_i32_0 = arith.constant 0 : i32
    %c0_i32_1 = arith.constant 0 : i32
    return %c0_i32, %c0_i32_0 : i32, i32
  }
  func.func @transform_8(%arg0: i32, %arg1: i32) -> (i32, i32, i32) {
    %c0_i32 = arith.constant 0 : i32
    %c0_i32_0 = arith.constant 0 : i32
    return %arg0, %c0_i32, %arg1 : i32, i32, i32
  }
}

module attributes {stable_mosaic.version = 11 : i64} {
  func.func @_pass1_kernel(%arg0: i32, %arg1: i32, %arg2: memref<1x4x128xf32, #tpu.memory_space<vmem>>, %arg3: memref<1x4x8x16xf32, #tpu.memory_space<vmem>>, %arg4: memref<1x4x8x16xf32, #tpu.memory_space<vmem>>, %arg5: memref<9x128xf32, #tpu.memory_space<vmem>>, %arg6: memref<4x6xf32, #tpu.memory_space<vmem>>, %arg7: memref<8x5xf32, #tpu.memory_space<vmem>>, %arg8: memref<8x10xf32, #tpu.memory_space<vmem>>, %arg9: memref<1x4x128xf32, #tpu.memory_space<vmem>>, %arg10: memref<1x4x1xf32, #tpu.memory_space<vmem>>) attributes {dimension_semantics = [#tpu.dimension_semantics<parallel>, #tpu.dimension_semantics<arbitrary>], iteration_bounds = array<i64: 2, 2>, scalar_prefetch = 0 : i64, scratch_operands = 0 : i64, tpu.core_type = #tpu.core_type<tc>, window_params = [{transform_indices = @transform_0, window_bounds = array<i64: 1, 4, 128>}, {transform_indices = @transform_1, window_bounds = array<i64: 1, 4, 8, 16>}, {transform_indices = @transform_2, window_bounds = array<i64: 1, 4, 8, 16>}, {pipeline_mode = #tpu.pipeline_mode<synchronous>, transform_indices = @transform_3, window_bounds = array<i64: 9, 128>}, {pipeline_mode = #tpu.pipeline_mode<synchronous>, transform_indices = @transform_4, window_bounds = array<i64: 4, 6>}, {pipeline_mode = #tpu.pipeline_mode<synchronous>, transform_indices = @transform_5, window_bounds = array<i64: 8, 5>}, {pipeline_mode = #tpu.pipeline_mode<synchronous>, transform_indices = @transform_6, window_bounds = array<i64: 8, 10>}, {transform_indices = @transform_7, window_bounds = array<i64: 1, 4, 128>}, {transform_indices = @transform_8, window_bounds = array<i64: 1, 4, 1>}]} {
    %c0 = arith.constant 0 : index
    %c0_0 = arith.constant 0 : index
    %0 = vector.load %arg6[%c0, %c0_0] : memref<4x6xf32, #tpu.memory_space<vmem>>, vector<4x6xf32>
    %1 = vector.extract_strided_slice %0 {offsets = [0, 0], sizes = [4, 1], strides = [1, 1]} : vector<4x6xf32> to vector<4x1xf32>
    %2 = vector.extract_strided_slice %0 {offsets = [0, 1], sizes = [4, 1], strides = [1, 1]} : vector<4x6xf32> to vector<4x1xf32>
    %c0_1 = arith.constant 0 : index
    %c0_2 = arith.constant 0 : index
    %3 = vector.load %arg7[%c0_1, %c0_2] : memref<8x5xf32, #tpu.memory_space<vmem>>, vector<8x5xf32>
    %c0_3 = arith.constant 0 : index
    %c0_4 = arith.constant 0 : index
    %4 = vector.load %arg8[%c0_3, %c0_4] : memref<8x10xf32, #tpu.memory_space<vmem>>, vector<8x10xf32>
    %c0_5 = arith.constant 0 : index
    %c0_6 = arith.constant 0 : index
    %5 = vector.load %arg5[%c0_5, %c0_6] : memref<9x128xf32, #tpu.memory_space<vmem>>, vector<9x128xf32>
    %c0_7 = arith.constant 0 : index
    %c0_8 = arith.constant 0 : index
    %c0_9 = arith.constant 0 : index
    %6 = vector.load %arg2[%c0_7, %c0_8, %c0_9] : memref<1x4x128xf32, #tpu.memory_space<vmem>>, vector<1x4x128xf32>
    %7 = vector.shape_cast %6 : vector<1x4x128xf32> to vector<4x128xf32>
    %cst = arith.constant dense<0.000000e+00> : vector<128xf32>
    %8 = vector.multi_reduction <add>, %7, %cst [0] : vector<4x128xf32> to vector<128xf32>
    %9 = vector.shape_cast %8 : vector<128xf32> to vector<1x128xf32>
    %10 = arith.mulf %7, %7 : vector<4x128xf32>
    %cst_10 = arith.constant dense<0.000000e+00> : vector<128xf32>
    %11 = vector.multi_reduction <add>, %10, %cst_10 [0] : vector<4x128xf32> to vector<128xf32>
    %12 = vector.shape_cast %11 : vector<128xf32> to vector<1x128xf32>
    %cst_11 = arith.constant 2.500000e-01 : f32
    %13 = vector.broadcast %cst_11 : f32 to vector<1x128xf32>
    %14 = arith.mulf %9, %13 : vector<1x128xf32>
    %cst_12 = arith.constant 2.500000e-01 : f32
    %15 = vector.broadcast %cst_12 : f32 to vector<1x128xf32>
    %16 = arith.mulf %12, %15 : vector<1x128xf32>
    %17 = arith.mulf %14, %14 : vector<1x128xf32>
    %18 = arith.subf %16, %17 : vector<1x128xf32>
    %19 = vector.broadcast %14 : vector<1x128xf32> to vector<4x128xf32>
    %20 = arith.subf %7, %19 : vector<4x128xf32>
    %cst_13 = arith.constant 9.99999997E-7 : f32
    %21 = vector.broadcast %cst_13 : f32 to vector<1x128xf32>
    %22 = arith.addf %18, %21 : vector<1x128xf32>
    %23 = math.rsqrt %22 : vector<1x128xf32>
    %24 = vector.broadcast %23 : vector<1x128xf32> to vector<4x128xf32>
    %25 = arith.mulf %20, %24 : vector<4x128xf32>
    %26 = vector.broadcast %1 : vector<4x1xf32> to vector<4x128xf32>
    %27 = arith.mulf %25, %26 : vector<4x128xf32>
    %28 = vector.broadcast %2 : vector<4x1xf32> to vector<4x128xf32>
    %29 = arith.addf %27, %28 : vector<4x128xf32>
    %30 = vector.extract_strided_slice %3 {offsets = [0, 4], sizes = [8, 1], strides = [1, 1]} : vector<8x5xf32> to vector<8x1xf32>
    %31 = vector.extract_strided_slice %3 {offsets = [0, 0], sizes = [8, 1], strides = [1, 1]} : vector<8x5xf32> to vector<8x1xf32>
    %32 = vector.extract_strided_slice %29 {offsets = [0, 0], sizes = [1, 128], strides = [1, 1]} : vector<4x128xf32> to vector<1x128xf32>
    %33 = vector.broadcast %31 : vector<8x1xf32> to vector<8x128xf32>
    %34 = vector.broadcast %32 : vector<1x128xf32> to vector<8x128xf32>
    %35 = arith.mulf %33, %34 : vector<8x128xf32>
    %36 = vector.broadcast %30 : vector<8x1xf32> to vector<8x128xf32>
    %37 = arith.addf %36, %35 : vector<8x128xf32>
    %38 = vector.extract_strided_slice %3 {offsets = [0, 1], sizes = [8, 1], strides = [1, 1]} : vector<8x5xf32> to vector<8x1xf32>
    %39 = vector.extract_strided_slice %29 {offsets = [1, 0], sizes = [1, 128], strides = [1, 1]} : vector<4x128xf32> to vector<1x128xf32>
    %40 = vector.broadcast %38 : vector<8x1xf32> to vector<8x128xf32>
    %41 = vector.broadcast %39 : vector<1x128xf32> to vector<8x128xf32>
    %42 = arith.mulf %40, %41 : vector<8x128xf32>
    %43 = arith.addf %37, %42 : vector<8x128xf32>
    %44 = vector.extract_strided_slice %3 {offsets = [0, 2], sizes = [8, 1], strides = [1, 1]} : vector<8x5xf32> to vector<8x1xf32>
    %45 = vector.extract_strided_slice %29 {offsets = [2, 0], sizes = [1, 128], strides = [1, 1]} : vector<4x128xf32> to vector<1x128xf32>
    %46 = vector.broadcast %44 : vector<8x1xf32> to vector<8x128xf32>
    %47 = vector.broadcast %45 : vector<1x128xf32> to vector<8x128xf32>
    %48 = arith.mulf %46, %47 : vector<8x128xf32>
    %49 = arith.addf %43, %48 : vector<8x128xf32>
    %50 = vector.extract_strided_slice %3 {offsets = [0, 3], sizes = [8, 1], strides = [1, 1]} : vector<8x5xf32> to vector<8x1xf32>
    %51 = vector.extract_strided_slice %29 {offsets = [3, 0], sizes = [1, 128], strides = [1, 1]} : vector<4x128xf32> to vector<1x128xf32>
    %52 = vector.broadcast %50 : vector<8x1xf32> to vector<8x128xf32>
    %53 = vector.broadcast %51 : vector<1x128xf32> to vector<8x128xf32>
    %54 = arith.mulf %52, %53 : vector<8x128xf32>
    %55 = arith.addf %49, %54 : vector<8x128xf32>
    %56 = vector.extract_strided_slice %4 {offsets = [0, 4], sizes = [8, 1], strides = [1, 1]} : vector<8x10xf32> to vector<8x1xf32>
    %57 = vector.broadcast %56 : vector<8x1xf32> to vector<8x128xf32>
    %58 = arith.mulf %57, %55 : vector<8x128xf32>
    %c17_i32 = arith.constant 17 : i32
    %59 = tpu.dynamic_rotate %55 by %c17_i32 dim 1 : vector<8x128xf32>, i32 -> vector<8x128xf32>
    %60 = vector.extract_strided_slice %4 {offsets = [0, 0], sizes = [8, 1], strides = [1, 1]} : vector<8x10xf32> to vector<8x1xf32>
    %61 = vector.extract_strided_slice %5 {offsets = [0, 0], sizes = [1, 128], strides = [1, 1]} : vector<9x128xf32> to vector<1x128xf32>
    %62 = vector.broadcast %61 : vector<1x128xf32> to vector<8x128xf32>
    %63 = arith.mulf %59, %62 : vector<8x128xf32>
    %64 = vector.broadcast %60 : vector<8x1xf32> to vector<8x128xf32>
    %65 = arith.mulf %64, %63 : vector<8x128xf32>
    %66 = arith.addf %58, %65 : vector<8x128xf32>
    %c16_i32 = arith.constant 16 : i32
    %67 = tpu.dynamic_rotate %55 by %c16_i32 dim 1 : vector<8x128xf32>, i32 -> vector<8x128xf32>
    %68 = vector.extract_strided_slice %4 {offsets = [0, 1], sizes = [8, 1], strides = [1, 1]} : vector<8x10xf32> to vector<8x1xf32>
    %69 = vector.extract_strided_slice %5 {offsets = [1, 0], sizes = [1, 128], strides = [1, 1]} : vector<9x128xf32> to vector<1x128xf32>
    %70 = vector.broadcast %69 : vector<1x128xf32> to vector<8x128xf32>
    %71 = arith.mulf %67, %70 : vector<8x128xf32>
    %72 = vector.broadcast %68 : vector<8x1xf32> to vector<8x128xf32>
    %73 = arith.mulf %72, %71 : vector<8x128xf32>
    %74 = arith.addf %66, %73 : vector<8x128xf32>
    %c15_i32 = arith.constant 15 : i32
    %75 = tpu.dynamic_rotate %55 by %c15_i32 dim 1 : vector<8x128xf32>, i32 -> vector<8x128xf32>
    %76 = vector.extract_strided_slice %4 {offsets = [0, 2], sizes = [8, 1], strides = [1, 1]} : vector<8x10xf32> to vector<8x1xf32>
    %77 = vector.extract_strided_slice %5 {offsets = [2, 0], sizes = [1, 128], strides = [1, 1]} : vector<9x128xf32> to vector<1x128xf32>
    %78 = vector.broadcast %77 : vector<1x128xf32> to vector<8x128xf32>
    %79 = arith.mulf %75, %78 : vector<8x128xf32>
    %80 = vector.broadcast %76 : vector<8x1xf32> to vector<8x128xf32>
    %81 = arith.mulf %80, %79 : vector<8x128xf32>
    %82 = arith.addf %74, %81 : vector<8x128xf32>
    %c1_i32 = arith.constant 1 : i32
    %83 = tpu.dynamic_rotate %55 by %c1_i32 dim 1 : vector<8x128xf32>, i32 -> vector<8x128xf32>
    %84 = vector.extract_strided_slice %4 {offsets = [0, 3], sizes = [8, 1], strides = [1, 1]} : vector<8x10xf32> to vector<8x1xf32>
    %85 = vector.extract_strided_slice %5 {offsets = [3, 0], sizes = [1, 128], strides = [1, 1]} : vector<9x128xf32> to vector<1x128xf32>
    %86 = vector.broadcast %85 : vector<1x128xf32> to vector<8x128xf32>
    %87 = arith.mulf %83, %86 : vector<8x128xf32>
    %88 = vector.broadcast %84 : vector<8x1xf32> to vector<8x128xf32>
    %89 = arith.mulf %88, %87 : vector<8x128xf32>
    %90 = arith.addf %82, %89 : vector<8x128xf32>
    %c127_i32 = arith.constant 127 : i32
    %91 = tpu.dynamic_rotate %55 by %c127_i32 dim 1 : vector<8x128xf32>, i32 -> vector<8x128xf32>
    %92 = vector.extract_strided_slice %4 {offsets = [0, 5], sizes = [8, 1], strides = [1, 1]} : vector<8x10xf32> to vector<8x1xf32>
    %93 = vector.extract_strided_slice %5 {offsets = [5, 0], sizes = [1, 128], strides = [1, 1]} : vector<9x128xf32> to vector<1x128xf32>
    %94 = vector.broadcast %93 : vector<1x128xf32> to vector<8x128xf32>
    %95 = arith.mulf %91, %94 : vector<8x128xf32>
    %96 = vector.broadcast %92 : vector<8x1xf32> to vector<8x128xf32>
    %97 = arith.mulf %96, %95 : vector<8x128xf32>
    %98 = arith.addf %90, %97 : vector<8x128xf32>
    %c113_i32 = arith.constant 113 : i32
    %99 = tpu.dynamic_rotate %55 by %c113_i32 dim 1 : vector<8x128xf32>, i32 -> vector<8x128xf32>
    %100 = vector.extract_strided_slice %4 {offsets = [0, 6], sizes = [8, 1], strides = [1, 1]} : vector<8x10xf32> to vector<8x1xf32>
    %101 = vector.extract_strided_slice %5 {offsets = [6, 0], sizes = [1, 128], strides = [1, 1]} : vector<9x128xf32> to vector<1x128xf32>
    %102 = vector.broadcast %101 : vector<1x128xf32> to vector<8x128xf32>
    %103 = arith.mulf %99, %102 : vector<8x128xf32>
    %104 = vector.broadcast %100 : vector<8x1xf32> to vector<8x128xf32>
    %105 = arith.mulf %104, %103 : vector<8x128xf32>
    %106 = arith.addf %98, %105 : vector<8x128xf32>
    %c112_i32 = arith.constant 112 : i32
    %107 = tpu.dynamic_rotate %55 by %c112_i32 dim 1 : vector<8x128xf32>, i32 -> vector<8x128xf32>
    %108 = vector.extract_strided_slice %4 {offsets = [0, 7], sizes = [8, 1], strides = [1, 1]} : vector<8x10xf32> to vector<8x1xf32>
    %109 = vector.extract_strided_slice %5 {offsets = [7, 0], sizes = [1, 128], strides = [1, 1]} : vector<9x128xf32> to vector<1x128xf32>
    %110 = vector.broadcast %109 : vector<1x128xf32> to vector<8x128xf32>
    %111 = arith.mulf %107, %110 : vector<8x128xf32>
    %112 = vector.broadcast %108 : vector<8x1xf32> to vector<8x128xf32>
    %113 = arith.mulf %112, %111 : vector<8x128xf32>
    %114 = arith.addf %106, %113 : vector<8x128xf32>
    %c111_i32 = arith.constant 111 : i32
    %115 = tpu.dynamic_rotate %55 by %c111_i32 dim 1 : vector<8x128xf32>, i32 -> vector<8x128xf32>
    %116 = vector.extract_strided_slice %4 {offsets = [0, 8], sizes = [8, 1], strides = [1, 1]} : vector<8x10xf32> to vector<8x1xf32>
    %117 = vector.extract_strided_slice %5 {offsets = [8, 0], sizes = [1, 128], strides = [1, 1]} : vector<9x128xf32> to vector<1x128xf32>
    %118 = vector.broadcast %117 : vector<1x128xf32> to vector<8x128xf32>
    %119 = arith.mulf %115, %118 : vector<8x128xf32>
    %120 = vector.broadcast %116 : vector<8x1xf32> to vector<8x128xf32>
    %121 = arith.mulf %120, %119 : vector<8x128xf32>
    %122 = arith.addf %114, %121 : vector<8x128xf32>
    %c0_14 = arith.constant 0 : index
    %c0_15 = arith.constant 0 : index
    %c7 = arith.constant 7 : index
    %c0_16 = arith.constant 0 : index
    %123 = vector.load %arg3[%c0_14, %c0_15, %c7, %c0_16] : memref<1x4x8x16xf32, #tpu.memory_space<vmem>>, vector<1x4x1x16xf32>
    %124 = vector.shape_cast %123 : vector<1x4x1x16xf32> to vector<4x16xf32>
    %cst_17 = arith.constant dense<0.000000e+00> : vector<16xf32>
    %125 = vector.multi_reduction <add>, %124, %cst_17 [0] : vector<4x16xf32> to vector<16xf32>
    %126 = vector.shape_cast %125 : vector<16xf32> to vector<1x16xf32>
    %127 = arith.mulf %124, %124 : vector<4x16xf32>
    %cst_18 = arith.constant dense<0.000000e+00> : vector<16xf32>
    %128 = vector.multi_reduction <add>, %127, %cst_18 [0] : vector<4x16xf32> to vector<16xf32>
    %129 = vector.shape_cast %128 : vector<16xf32> to vector<1x16xf32>
    %cst_19 = arith.constant 2.500000e-01 : f32
    %130 = vector.broadcast %cst_19 : f32 to vector<1x16xf32>
    %131 = arith.mulf %126, %130 : vector<1x16xf32>
    %cst_20 = arith.constant 2.500000e-01 : f32
    %132 = vector.broadcast %cst_20 : f32 to vector<1x16xf32>
    %133 = arith.mulf %129, %132 : vector<1x16xf32>
    %134 = arith.mulf %131, %131 : vector<1x16xf32>
    %135 = arith.subf %133, %134 : vector<1x16xf32>
    %136 = vector.broadcast %131 : vector<1x16xf32> to vector<4x16xf32>
    %137 = arith.subf %124, %136 : vector<4x16xf32>
    %cst_21 = arith.constant 9.99999997E-7 : f32
    %138 = vector.broadcast %cst_21 : f32 to vector<1x16xf32>
    %139 = arith.addf %135, %138 : vector<1x16xf32>
    %140 = math.rsqrt %139 : vector<1x16xf32>
    %141 = vector.broadcast %140 : vector<1x16xf32> to vector<4x16xf32>
    %142 = arith.mulf %137, %141 : vector<4x16xf32>
    %143 = vector.broadcast %1 : vector<4x1xf32> to vector<4x16xf32>
    %144 = arith.mulf %142, %143 : vector<4x16xf32>
    %145 = vector.broadcast %2 : vector<4x1xf32> to vector<4x16xf32>
    %146 = arith.addf %144, %145 : vector<4x16xf32>
    %147 = vector.extract_strided_slice %3 {offsets = [0, 4], sizes = [8, 1], strides = [1, 1]} : vector<8x5xf32> to vector<8x1xf32>
    %148 = vector.extract_strided_slice %3 {offsets = [0, 0], sizes = [8, 1], strides = [1, 1]} : vector<8x5xf32> to vector<8x1xf32>
    %149 = vector.extract_strided_slice %146 {offsets = [0, 0], sizes = [1, 16], strides = [1, 1]} : vector<4x16xf32> to vector<1x16xf32>
    %150 = vector.broadcast %148 : vector<8x1xf32> to vector<8x16xf32>
    %151 = vector.broadcast %149 : vector<1x16xf32> to vector<8x16xf32>
    %152 = arith.mulf %150, %151 : vector<8x16xf32>
    %153 = vector.broadcast %147 : vector<8x1xf32> to vector<8x16xf32>
    %154 = arith.addf %153, %152 : vector<8x16xf32>
    %155 = vector.extract_strided_slice %3 {offsets = [0, 1], sizes = [8, 1], strides = [1, 1]} : vector<8x5xf32> to vector<8x1xf32>
    %156 = vector.extract_strided_slice %146 {offsets = [1, 0], sizes = [1, 16], strides = [1, 1]} : vector<4x16xf32> to vector<1x16xf32>
    %157 = vector.broadcast %155 : vector<8x1xf32> to vector<8x16xf32>
    %158 = vector.broadcast %156 : vector<1x16xf32> to vector<8x16xf32>
    %159 = arith.mulf %157, %158 : vector<8x16xf32>
    %160 = arith.addf %154, %159 : vector<8x16xf32>
    %161 = vector.extract_strided_slice %3 {offsets = [0, 2], sizes = [8, 1], strides = [1, 1]} : vector<8x5xf32> to vector<8x1xf32>
    %162 = vector.extract_strided_slice %146 {offsets = [2, 0], sizes = [1, 16], strides = [1, 1]} : vector<4x16xf32> to vector<1x16xf32>
    %163 = vector.broadcast %161 : vector<8x1xf32> to vector<8x16xf32>
    %164 = vector.broadcast %162 : vector<1x16xf32> to vector<8x16xf32>
    %165 = arith.mulf %163, %164 : vector<8x16xf32>
    %166 = arith.addf %160, %165 : vector<8x16xf32>
    %167 = vector.extract_strided_slice %3 {offsets = [0, 3], sizes = [8, 1], strides = [1, 1]} : vector<8x5xf32> to vector<8x1xf32>
    %168 = vector.extract_strided_slice %146 {offsets = [3, 0], sizes = [1, 16], strides = [1, 1]} : vector<4x16xf32> to vector<1x16xf32>
    %169 = vector.broadcast %167 : vector<8x1xf32> to vector<8x16xf32>
    %170 = vector.broadcast %168 : vector<1x16xf32> to vector<8x16xf32>
    %171 = arith.mulf %169, %170 : vector<8x16xf32>
    %172 = arith.addf %166, %171 : vector<8x16xf32>
    %cst_22 = arith.constant 0.000000e+00 : f32
    %173 = vector.broadcast %cst_22 : f32 to vector<8x1xf32>
    %174 = vector.extract_strided_slice %172 {offsets = [0, 0], sizes = [8, 15], strides = [1, 1]} : vector<8x16xf32> to vector<8x15xf32>
    %175 = tpu.concatenate %173, %174 in 1 : vector<8x1xf32>, vector<8x15xf32> -> vector<8x16xf32>
    %176 = vector.extract_strided_slice %172 {offsets = [0, 1], sizes = [8, 15], strides = [1, 1]} : vector<8x16xf32> to vector<8x15xf32>
    %177 = tpu.concatenate %176, %173 in 1 : vector<8x15xf32>, vector<8x1xf32> -> vector<8x16xf32>
    %178 = vector.extract_strided_slice %4 {offsets = [0, 0], sizes = [8, 1], strides = [1, 1]} : vector<8x10xf32> to vector<8x1xf32>
    %179 = vector.broadcast %178 : vector<8x1xf32> to vector<8x16xf32>
    %180 = arith.mulf %179, %175 : vector<8x16xf32>
    %181 = vector.extract_strided_slice %4 {offsets = [0, 1], sizes = [8, 1], strides = [1, 1]} : vector<8x10xf32> to vector<8x1xf32>
    %182 = vector.broadcast %181 : vector<8x1xf32> to vector<8x16xf32>
    %183 = arith.mulf %182, %172 : vector<8x16xf32>
    %184 = arith.addf %180, %183 : vector<8x16xf32>
    %185 = vector.extract_strided_slice %4 {offsets = [0, 2], sizes = [8, 1], strides = [1, 1]} : vector<8x10xf32> to vector<8x1xf32>
    %186 = vector.broadcast %185 : vector<8x1xf32> to vector<8x16xf32>
    %187 = arith.mulf %186, %177 : vector<8x16xf32>
    %188 = arith.addf %184, %187 : vector<8x16xf32>
    %c0_i32 = arith.constant 0 : i32
    %189 = arith.cmpi sgt, %arg1, %c0_i32 : i32
    %190 = arith.extui %189 : i1 to i32
    %191 = arith.sitofp %190 : i32 to f32
    %192 = vector.broadcast %191 : f32 to vector<8x16xf32>
    %193 = arith.mulf %188, %192 : vector<8x16xf32>
    %c0_23 = arith.constant 0 : index
    %c0_24 = arith.constant 0 : index
    %c0_25 = arith.constant 0 : index
    %c0_26 = arith.constant 0 : index
    %194 = vector.load %arg4[%c0_23, %c0_24, %c0_25, %c0_26] : memref<1x4x8x16xf32, #tpu.memory_space<vmem>>, vector<1x4x1x16xf32>
    %195 = vector.shape_cast %194 : vector<1x4x1x16xf32> to vector<4x16xf32>
    %cst_27 = arith.constant dense<0.000000e+00> : vector<16xf32>
    %196 = vector.multi_reduction <add>, %195, %cst_27 [0] : vector<4x16xf32> to vector<16xf32>
    %197 = vector.shape_cast %196 : vector<16xf32> to vector<1x16xf32>
    %198 = arith.mulf %195, %195 : vector<4x16xf32>
    %cst_28 = arith.constant dense<0.000000e+00> : vector<16xf32>
    %199 = vector.multi_reduction <add>, %198, %cst_28 [0] : vector<4x16xf32> to vector<16xf32>
    %200 = vector.shape_cast %199 : vector<16xf32> to vector<1x16xf32>
    %cst_29 = arith.constant 2.500000e-01 : f32
    %201 = vector.broadcast %cst_29 : f32 to vector<1x16xf32>
    %202 = arith.mulf %197, %201 : vector<1x16xf32>
    %cst_30 = arith.constant 2.500000e-01 : f32
    %203 = vector.broadcast %cst_30 : f32 to vector<1x16xf32>
    %204 = arith.mulf %200, %203 : vector<1x16xf32>
    %205 = arith.mulf %202, %202 : vector<1x16xf32>
    %206 = arith.subf %204, %205 : vector<1x16xf32>
    %207 = vector.broadcast %202 : vector<1x16xf32> to vector<4x16xf32>
    %208 = arith.subf %195, %207 : vector<4x16xf32>
    %cst_31 = arith.constant 9.99999997E-7 : f32
    %209 = vector.broadcast %cst_31 : f32 to vector<1x16xf32>
    %210 = arith.addf %206, %209 : vector<1x16xf32>
    %211 = math.rsqrt %210 : vector<1x16xf32>
    %212 = vector.broadcast %211 : vector<1x16xf32> to vector<4x16xf32>
    %213 = arith.mulf %208, %212 : vector<4x16xf32>
    %214 = vector.broadcast %1 : vector<4x1xf32> to vector<4x16xf32>
    %215 = arith.mulf %213, %214 : vector<4x16xf32>
    %216 = vector.broadcast %2 : vector<4x1xf32> to vector<4x16xf32>
    %217 = arith.addf %215, %216 : vector<4x16xf32>
    %218 = vector.extract_strided_slice %3 {offsets = [0, 4], sizes = [8, 1], strides = [1, 1]} : vector<8x5xf32> to vector<8x1xf32>
    %219 = vector.extract_strided_slice %3 {offsets = [0, 0], sizes = [8, 1], strides = [1, 1]} : vector<8x5xf32> to vector<8x1xf32>
    %220 = vector.extract_strided_slice %217 {offsets = [0, 0], sizes = [1, 16], strides = [1, 1]} : vector<4x16xf32> to vector<1x16xf32>
    %221 = vector.broadcast %219 : vector<8x1xf32> to vector<8x16xf32>
    %222 = vector.broadcast %220 : vector<1x16xf32> to vector<8x16xf32>
    %223 = arith.mulf %221, %222 : vector<8x16xf32>
    %224 = vector.broadcast %218 : vector<8x1xf32> to vector<8x16xf32>
    %225 = arith.addf %224, %223 : vector<8x16xf32>
    %226 = vector.extract_strided_slice %3 {offsets = [0, 1], sizes = [8, 1], strides = [1, 1]} : vector<8x5xf32> to vector<8x1xf32>
    %227 = vector.extract_strided_slice %217 {offsets = [1, 0], sizes = [1, 16], strides = [1, 1]} : vector<4x16xf32> to vector<1x16xf32>
    %228 = vector.broadcast %226 : vector<8x1xf32> to vector<8x16xf32>
    %229 = vector.broadcast %227 : vector<1x16xf32> to vector<8x16xf32>
    %230 = arith.mulf %228, %229 : vector<8x16xf32>
    %231 = arith.addf %225, %230 : vector<8x16xf32>
    %232 = vector.extract_strided_slice %3 {offsets = [0, 2], sizes = [8, 1], strides = [1, 1]} : vector<8x5xf32> to vector<8x1xf32>
    %233 = vector.extract_strided_slice %217 {offsets = [2, 0], sizes = [1, 16], strides = [1, 1]} : vector<4x16xf32> to vector<1x16xf32>
    %234 = vector.broadcast %232 : vector<8x1xf32> to vector<8x16xf32>
    %235 = vector.broadcast %233 : vector<1x16xf32> to vector<8x16xf32>
    %236 = arith.mulf %234, %235 : vector<8x16xf32>
    %237 = arith.addf %231, %236 : vector<8x16xf32>
    %238 = vector.extract_strided_slice %3 {offsets = [0, 3], sizes = [8, 1], strides = [1, 1]} : vector<8x5xf32> to vector<8x1xf32>
    %239 = vector.extract_strided_slice %217 {offsets = [3, 0], sizes = [1, 16], strides = [1, 1]} : vector<4x16xf32> to vector<1x16xf32>
    %240 = vector.broadcast %238 : vector<8x1xf32> to vector<8x16xf32>
    %241 = vector.broadcast %239 : vector<1x16xf32> to vector<8x16xf32>
    %242 = arith.mulf %240, %241 : vector<8x16xf32>
    %243 = arith.addf %237, %242 : vector<8x16xf32>
    %cst_32 = arith.constant 0.000000e+00 : f32
    %244 = vector.broadcast %cst_32 : f32 to vector<8x1xf32>
    %245 = vector.extract_strided_slice %243 {offsets = [0, 0], sizes = [8, 15], strides = [1, 1]} : vector<8x16xf32> to vector<8x15xf32>
    %246 = tpu.concatenate %244, %245 in 1 : vector<8x1xf32>, vector<8x15xf32> -> vector<8x16xf32>
    %247 = vector.extract_strided_slice %243 {offsets = [0, 1], sizes = [8, 15], strides = [1, 1]} : vector<8x16xf32> to vector<8x15xf32>
    %248 = tpu.concatenate %247, %244 in 1 : vector<8x15xf32>, vector<8x1xf32> -> vector<8x16xf32>
    %249 = vector.extract_strided_slice %4 {offsets = [0, 6], sizes = [8, 1], strides = [1, 1]} : vector<8x10xf32> to vector<8x1xf32>
    %250 = vector.broadcast %249 : vector<8x1xf32> to vector<8x16xf32>
    %251 = arith.mulf %250, %246 : vector<8x16xf32>
    %252 = vector.extract_strided_slice %4 {offsets = [0, 7], sizes = [8, 1], strides = [1, 1]} : vector<8x10xf32> to vector<8x1xf32>
    %253 = vector.broadcast %252 : vector<8x1xf32> to vector<8x16xf32>
    %254 = arith.mulf %253, %243 : vector<8x16xf32>
    %255 = arith.addf %251, %254 : vector<8x16xf32>
    %256 = vector.extract_strided_slice %4 {offsets = [0, 8], sizes = [8, 1], strides = [1, 1]} : vector<8x10xf32> to vector<8x1xf32>
    %257 = vector.broadcast %256 : vector<8x1xf32> to vector<8x16xf32>
    %258 = arith.mulf %257, %248 : vector<8x16xf32>
    %259 = arith.addf %255, %258 : vector<8x16xf32>
    %c1_i32_33 = arith.constant 1 : i32
    %260 = arith.cmpi slt, %arg1, %c1_i32_33 : i32
    %261 = arith.extui %260 : i1 to i32
    %262 = arith.sitofp %261 : i32 to f32
    %263 = vector.broadcast %262 : f32 to vector<8x16xf32>
    %264 = arith.mulf %259, %263 : vector<8x16xf32>
    %cst_34 = arith.constant 0.000000e+00 : f32
    %265 = vector.broadcast %cst_34 : f32 to vector<8x112xf32>
    %266 = tpu.concatenate %193, %265 in 1 : vector<8x16xf32>, vector<8x112xf32> -> vector<8x128xf32>
    %267 = arith.addf %122, %266 : vector<8x128xf32>
    %268 = tpu.concatenate %265, %264 in 1 : vector<8x112xf32>, vector<8x16xf32> -> vector<8x128xf32>
    %269 = arith.addf %267, %268 : vector<8x128xf32>
    %270 = vector.extract_strided_slice %4 {offsets = [0, 9], sizes = [8, 1], strides = [1, 1]} : vector<8x10xf32> to vector<8x1xf32>
    %271 = vector.broadcast %270 : vector<8x1xf32> to vector<8x128xf32>
    %272 = arith.addf %269, %271 : vector<8x128xf32>
    %273 = vector.extract_strided_slice %272 {offsets = [0, 0], sizes = [4, 128], strides = [1, 1]} : vector<8x128xf32> to vector<4x128xf32>
    %274 = vector.extract_strided_slice %272 {offsets = [4, 0], sizes = [4, 128], strides = [1, 1]} : vector<8x128xf32> to vector<4x128xf32>
    %275 = arith.mulf %273, %274 : vector<4x128xf32>
    %c0_35 = arith.constant 0 : index
    %c0_36 = arith.constant 0 : index
    %c0_37 = arith.constant 0 : index
    %276 = vector.load %arg9[%c0_35, %c0_36, %c0_37] : memref<1x4x128xf32, #tpu.memory_space<vmem>>, vector<1x4x128xf32>
    %277 = vector.shape_cast %276 : vector<1x4x128xf32> to vector<4x128xf32>
    %278 = vector.shape_cast %275 : vector<4x128xf32> to vector<1x4x128xf32>
    tpu.vector_store %arg9[%c0_35, %c0_36, %c0_37], %278 {strides = array<i32>} : memref<1x4x128xf32, #tpu.memory_space<vmem>>, vector<1x4x128xf32>,
    %c0_i32_38 = arith.constant 0 : i32
    %279 = arith.cmpi eq, %arg1, %c0_i32_38 : i32
    %280 = arith.extui %279 : i1 to i32
    %c0_i32_39 = arith.constant 0 : i32
    %281 = arith.cmpi ne, %280, %c0_i32_39 : i32
    scf.if %281 {
      %cst_47 = arith.constant 0.000000e+00 : f32
      %288 = vector.broadcast %cst_47 : f32 to vector<1x4x1xf32>
      %c0_48 = arith.constant 0 : index
      %c0_49 = arith.constant 0 : index
      %c0_50 = arith.constant 0 : index
      %289 = vector.load %arg10[%c0_48, %c0_49, %c0_50] : memref<1x4x1xf32, #tpu.memory_space<vmem>>, vector<1x4x1xf32>
      tpu.vector_store %arg10[%c0_48, %c0_49, %c0_50], %288 {strides = array<i32>} : memref<1x4x1xf32, #tpu.memory_space<vmem>>, vector<1x4x1xf32>,
    } else {
    }
    %c0_40 = arith.constant 0 : index
    %c0_41 = arith.constant 0 : index
    %c0_42 = arith.constant 0 : index
    %282 = vector.load %arg10[%c0_40, %c0_41, %c0_42] : memref<1x4x1xf32, #tpu.memory_space<vmem>>, vector<1x4x1xf32>
    %cst_43 = arith.constant dense<0.000000e+00> : vector<4xf32>
    %283 = vector.multi_reduction <add>, %275, %cst_43 [1] : vector<4x128xf32> to vector<4xf32>
    %284 = vector.shape_cast %283 : vector<4xf32> to vector<4x1xf32>
    %285 = vector.shape_cast %284 : vector<4x1xf32> to vector<1x4x1xf32>
    %286 = arith.addf %282, %285 : vector<1x4x1xf32>
    %c0_44 = arith.constant 0 : index
    %c0_45 = arith.constant 0 : index
    %c0_46 = arith.constant 0 : index
    %287 = vector.load %arg10[%c0_44, %c0_45, %c0_46] : memref<1x4x1xf32, #tpu.memory_space<vmem>>, vector<1x4x1xf32>
    tpu.vector_store %arg10[%c0_44, %c0_45, %c0_46], %286 {strides = array<i32>} : memref<1x4x1xf32, #tpu.memory_space<vmem>>, vector<1x4x1xf32>,
    return
  }
  func.func @transform_0(%arg0: i32, %arg1: i32) -> (i32, i32, i32) {
    %c0_i32 = arith.constant 0 : i32
    %c0_i32_0 = arith.constant 0 : i32
    return %arg0, %c0_i32, %arg1 : i32, i32, i32
  }
  func.func @transform_1(%arg0: i32, %arg1: i32) -> (i32, i32, i32, i32) {
    %c1_i32 = arith.constant 1 : i32
    %0 = arith.muli %arg1, %c1_i32 : i32
    %c1_i32_0 = arith.constant 1 : i32
    %1 = arith.subi %0, %c1_i32_0 : i32
    %c0_i32 = arith.constant 0 : i32
    %2 = arith.maxsi %1, %c0_i32 : i32
    %c0_i32_1 = arith.constant 0 : i32
    %c0_i32_2 = arith.constant 0 : i32
    %c0_i32_3 = arith.constant 0 : i32
    return %arg0, %c0_i32_1, %2, %c0_i32_2 : i32, i32, i32, i32
  }
  func.func @transform_2(%arg0: i32, %arg1: i32) -> (i32, i32, i32, i32) {
    %c1_i32 = arith.constant 1 : i32
    %0 = arith.addi %arg1, %c1_i32 : i32
    %c1_i32_0 = arith.constant 1 : i32
    %1 = arith.muli %0, %c1_i32_0 : i32
    %c1_i32_1 = arith.constant 1 : i32
    %2 = arith.minsi %1, %c1_i32_1 : i32
    %c0_i32 = arith.constant 0 : i32
    %c0_i32_2 = arith.constant 0 : i32
    %c0_i32_3 = arith.constant 0 : i32
    return %arg0, %c0_i32, %2, %c0_i32_2 : i32, i32, i32, i32
  }
  func.func @transform_3(%arg0: i32, %arg1: i32) -> (i32, i32) {
    %c0_i32 = arith.constant 0 : i32
    %c0_i32_0 = arith.constant 0 : i32
    %c0_i32_1 = arith.constant 0 : i32
    return %c0_i32, %c0_i32_0 : i32, i32
  }
  func.func @transform_4(%arg0: i32, %arg1: i32) -> (i32, i32) {
    %c0_i32 = arith.constant 0 : i32
    %c0_i32_0 = arith.constant 0 : i32
    %c0_i32_1 = arith.constant 0 : i32
    return %c0_i32, %c0_i32_0 : i32, i32
  }
  func.func @transform_5(%arg0: i32, %arg1: i32) -> (i32, i32) {
    %c0_i32 = arith.constant 0 : i32
    %c0_i32_0 = arith.constant 0 : i32
    %c0_i32_1 = arith.constant 0 : i32
    return %c0_i32, %c0_i32_0 : i32, i32
  }
  func.func @transform_6(%arg0: i32, %arg1: i32) -> (i32, i32) {
    %c0_i32 = arith.constant 0 : i32
    %c0_i32_0 = arith.constant 0 : i32
    %c0_i32_1 = arith.constant 0 : i32
    return %c0_i32, %c0_i32_0 : i32, i32
  }
  func.func @transform_7(%arg0: i32, %arg1: i32) -> (i32, i32, i32) {
    %c0_i32 = arith.constant 0 : i32
    %c0_i32_0 = arith.constant 0 : i32
    return %arg0, %c0_i32, %arg1 : i32, i32, i32
  }
  func.func @transform_8(%arg0: i32, %arg1: i32) -> (i32, i32, i32) {
    %c0_i32 = arith.constant 0 : i32
    %c0_i32_0 = arith.constant 0 : i32
    %c0_i32_1 = arith.constant 0 : i32
    return %arg0, %c0_i32, %c0_i32_0 : i32, i32, i32
  }
}

</mosaic_0001>

<bundles_post_ra>
// kernel: nafblock_forward.3
= control target key start
LH: loop header
LB: loop body
LE: loop exit
PB: predicated region body
PF: predicated region fallthrough
CT: control target
= control target key end

     0   :  { %s935_s27 = smov 0   ;;  %s937_s28 = smov 0   ;;  %s1051_s0 = inlined_call_operand.vmem [shape: f32[2,4,256], index: 0, kind: input, shape index: {}]   ;;  %s1052_s1 = inlined_call_operand.vmem [shape: f32[2,4,256], index: 1, kind: input, shape index: {}]   ;;  %s1053_s2 = inlined_call_operand.vmem [shape: f32[2,4,1], index: 2, kind: input, shape index: {}]   ;;  %s1054_s3 = inlined_call_operand.vmem [shape: f32[4,6], index: 3, kind: input, shape index: {}]   ;;  %s1055_s4 = inlined_call_operand.vmem [shape: f32[4,5], index: 4, kind: input, shape index: {}]   ;;  %s1056_s5 = inlined_call_operand.vmem [shape: f32[4,5], index: 5, kind: input, shape index: {}]   ;;  %s1057_s6 = inlined_call_operand.vmem [shape: f32[8,5], index: 6, kind: input, shape index: {}]   ;;  %s1058_s7 = inlined_call_operand.vmem [shape: f32[4,5], index: 7, kind: input, shape index: {}]   ;;  %s1059_s8 = inlined_call_operand.vmem [shape: f32[2,4,256], index: 8, kind: output, shape index: {}]  }
   0x1   :  { %s939_s29 = smov 0   ;;  %s941_s30 = smov 0  }
   0x2   :  { %s943_s9 = smov 0  }
   0x3 LB: > { %s27_s10 = sadd.s32 1, %s870_s29  ;;  %s30_s11 = sadd.s32 1, %s874_s30  ;;  %s878_s9 = sphi %s943_s9, %s18_s9   ;;  %s874_s30 = sphi %s941_s30, %s1063_s30   ;;  %s870_s29 = sphi %s939_s29, %s1062_s29   ;;  %s866_s28 = sphi %s937_s28, %s1061_s28   ;;  %s862_s27 = sphi %s935_s27, %s1060_s27  }
   0x4   : > { %p28_p0 = scmp.ge.s32.totalorder %s27_s10, 2  ;;  %p759_p1 = scmp.ge.s32.totalorder %s878_s9, 1 }
   0x5   : > { %p305_p2 = scmp.lt.s32.totalorder %s878_s9, 5 }
   0x6   : > { %s1065_s10 = smov (%p28_p0, %s27_s10), 0  ;;  %s1067_s11 = smov (!%p28_p0, %s30_s11), %s874_s30 }
   0x7   : > { %p306_p3 = pnand %p759_p1, %p305_p2  ;;  %p32_p4 = scmp.ge.s32.totalorder %s1067_s11, 2 }
   0x8   : > { %p357_p5 = scmp.lt.s32.totalorder (!%p306_p3), %s866_s28, 1  ;;  %s880_s18 = smov (!%p306_p3), 1  }
   0x9   : > { %s1069_s11 = smov (%p32_p4, %s1067_s11), 0  ;;  %309 = sbr.rel (%p306_p3) target bundleno = 483 (0x1e3), region = 52 }
   0xa   : > { %s881_s19 = smov (!%p306_p3), 3   ;;  %s882_s20 = smov (!%p306_p3), 2  }
   0xb   : > { %s883_s21 = smov (!%p306_p3), 4   ;;  %p359_p6 = scmp.lt.s32.totalorder (!%p306_p3), %s862_s27, 1 }
   0xe   : > { %v391_v0 = vlaneseq  ;;  %s1071_s28 = smov (!%p357_p5, %s866_s28), 1  ;;  %v390_v8 = vld [vmem:[%s1055_s4] sm:$0xf]  ;;  %v884_v14 = vmov 0   ;;  %v885_v15 = vmov 4   ;;  %v886_v23 = vmov 2  }
   0xf   : > { %s764_s12 = sshll.u32 %s1071_s28, 2  ;;  %819 = vset.pattern.permute.xlu0 %v884_v14  ;;  %820 = vset.pattern.permute.xlu1 %v885_v15  ;;  %v449_v22 = vld [vmem:[%s1056_s5] sm:$0xf]  ;;  %v887_v27 = vmov 3   ;;  %v888_v28 = vmov 5   ;;  %v889_v37 = vmov 1  }
  0x10   : > { %v392_v1 = vshrl.u32 %v391_v0, 7  ;;  %s376_s15 = scalar_lea.vmem %s1053_s2, %s764_s12  ;;  %v385_v24 = vld [vmem:[%s1054_s3] sm:$0xf]  ;;  %s1073_s27 = smov (!%p359_p6, %s862_s27), 1  ;;  %vm502_vm0 = vcmask 1043456  }
  0x11   : > { %v388_v5 = vld [vmem:[%s376_s15] sm:$0xf]  ;;  %s760_s15 = sshll.u32 %s1071_s28, 1 }
  0x12   : > { %v973_v2 = vsub.s32 1, %v392_v1  ;;  %v975_v3 = vsub.s32 3, %v392_v1  ;;  %v977_v4 = vsub.s32 0, %v392_v1  ;;  %v389_v6 = vmul.f32 0.00390625, %v388_v5  ;;  %v536_v25 = vld [vmem:[%s1057_s6] sm:$0xff]  ;;  %s362_s16 = sadd.s32 %s760_s15, %s1073_s27 }
  0x13   : > { %v979_v7 = vsub.s32 2, %v392_v1  ;;  %v586_v26 = vld [vmem:[%s1058_s7] sm:$0xf]  ;;  %s1003_s17 = sshll.u32 %s362_s16, 2 }
  0x14   : > { %v404_v9 = vrot.slane %v389_v6, %v973_v2  ;;  %v432_v10 = vrot.slane %v389_v6, %v975_v3  ;;  %v394_v11 = vrot.slane %v389_v6, %v977_v4  ;;  %s384_s24 = scalar_lea.vmem %s1059_s8, %s1003_s17 }
  0x15   : > { %v418_v12 = vrot.slane %v389_v6, %v979_v7 }
  0x16   : > { %406 = vrot.lane.b32.xlu0 %v404_v9, %s880_s18  ;;  %434 = vrot.lane.b32.xlu1 %v432_v10, %s881_s19  ;;  %v395_v13 = vmul.f32 %v394_v11, %v390_v8 }
  0x1a   : > { %420 = vrot.lane.b32.xlu0 %v418_v12, %s882_s20  ;;  %397 = vrot.lane.b32.xlu1 %v395_v13, %s883_s21  ;;  %s364_s21 = scalar_lea.vmem %s1051_s0, %s1003_s17 }
  0x1b   : > { %v386_v59 = vld [vmem:[%s364_s21] sm:$0xf] }
  0x88   : > { %v407_v16 = vpop.permute.xlu0 %406  ;;  %v435_v17 = vpop.permute.xlu1 %434 }
  0x89   : > { %v409_v18 = vmul.f32 %v407_v16, %v390_v8  ;;  %v437_v19 = vmul.f32 %v435_v17, %v390_v8 }
  0x8b   : > { %411 = vrot.lane.b32.xlu0 %v409_v18, %s881_s19 }
  0x8c   : > { %v421_v20 = vpop.permute.xlu0 %420  ;;  %v398_v29 = vpop.permute.xlu1 %397 }
  0x8d   : > { %v423_v21 = vmul.f32 %v421_v20, %v390_v8  ;;  %v400_v30 = vadd.f32 %v398_v29, %v390_v8 }
  0x8f   : > { %425 = vrot.lane.b32.xlu1 %v423_v21, %s882_s20  ;;  %439 = vrot.lane.b32.xlu0 %v437_v19, %s880_s18  ;;  %s372_s20 = scalar_lea.vmem %s1052_s1, %s1003_s17 }
  0x90   : > { %v387_v38 = vld [vmem:[%s372_s20] sm:$0xf] }
  0x93   : > { %452 = vperm.xlu0 %819, %v449_v22  }
  0x97   : > { %822 = vset.pattern.permute.xlu0 %v886_v23 }
  0x98   : > { %476 = vperm.xlu0 %822, %v449_v22  }
  0x9c   : > { %527 = vperm.xlu0 %822, %v385_v24  }
  0xa0   : > { %826 = vset.pattern.permute.xlu0 %v884_v14 }
  0xa1   : > { %539 = vperm.xlu0 %826, %v536_v25  }
  0xa5   : > { %829 = vset.pattern.permute.xlu0 %v886_v23 }
  0xa6   : > { %563 = vperm.xlu0 %829, %v536_v25  }
  0xaa   : > { %832 = vset.pattern.permute.xlu0 %v885_v15 }
  0xab   : > { %598 = vperm.xlu0 %832, %v586_v26  }
  0xaf   : > { %835 = vset.pattern.permute.xlu0 %v887_v27 }
  0xb0   : > { %623 = vperm.xlu0 %835, %v586_v26  }
  0xb4   : > { %837 = vset.pattern.permute.xlu0 %v888_v28 }
  0xfd   : > { %v412_v31 = vpop.permute.xlu0 %411 }
  0xfe   : > { %v414_v32 = vadd.f32 %v412_v31, %v400_v30 }
 0x101   : > { %v426_v33 = vpop.permute.xlu1 %425  ;;  %v440_v34 = vpop.permute.xlu0 %439 }
 0x102   : > { %v428_v35 = vadd.f32 %v426_v33, %v414_v32 }
 0x104   : > { %v442_v36 = vadd.f32 %v440_v34, %v428_v35 }
 0x106   : > { %445 = vperm.xlu1 %820, %v442_v36  }
 0x10a   : > { %461 = vperm.xlu1 %820, %v449_v22  }
 0x10e   : > { %821 = vset.pattern.permute.xlu1 %v889_v37  ;;  %v453_v41 = vpop.permute.xlu0 %452 }
 0x10f   : > { %466 = vperm.xlu1 %821, %v449_v22  }
 0x113   : > { %823 = vset.pattern.permute.xlu1 %v887_v27  ;;  %v477_v47 = vpop.permute.xlu0 %476 }
 0x114   : > { %486 = vperm.xlu1 %823, %v449_v22  }
 0x118   : > { %824 = vset.pattern.permute.xlu1 %v885_v15 }
 0x119   : > { %497 = vperm.xlu1 %824, %v385_v24  }
 0x11d   : > { %825 = vset.pattern.permute.xlu1 %v887_v27 }
 0x11e   : > { %532 = vperm.xlu1 %825, %v385_v24  }
 0x122   : > { %827 = vset.pattern.permute.xlu1 %v885_v15 }
 0x123   : > { %548 = vperm.xlu1 %827, %v536_v25  }
 0x127   : > { %828 = vset.pattern.permute.xlu1 %v889_v37 }
 0x128   : > { %553 = vperm.xlu1 %828, %v536_v25  }
 0x12c   : > { %830 = vset.pattern.permute.xlu1 %v887_v27 }
 0x12d   : > { %573 = vperm.xlu1 %830, %v536_v25  }
 0x131   : > { %831 = vset.pattern.permute.xlu1 %v884_v14 }
 0x132   : > { %589 = vperm.xlu1 %831, %v586_v26  }
 0x136   : > { %833 = vset.pattern.permute.xlu1 %v889_v37 }
 0x137   : > { %603 = vperm.xlu1 %833, %v586_v26  }
 0x13b   : > { %834 = vset.pattern.permute.xlu1 %v886_v23 }
 0x13c   : > { %613 = vperm.xlu1 %834, %v586_v26   ;;  %v528_v26 = vpop.permute.xlu0 %527 }
 0x140   : > { %836 = vset.pattern.permute.xlu1 %v888_v28  ;;  %v540_v29 = vpop.permute.xlu0 %539 }
 0x141   : > { %633 = vperm.xlu1 %836, %v385_v24  }
 0x144   : > { %v564_v36 = vpop.permute.xlu0 %563 }
 0x181   : > { %v446_v39 = vpop.permute.xlu1 %445 }
 0x182   : > { %v448_v40 = vmul.f32 %v446_v39, %v387_v38 }
 0x184   : > { %v458_v42 = vrot.slane %v448_v40, %v977_v4  ;;  %v482_v45 = vrot.slane %v448_v40, %v979_v7  ;;  %v472_v46 = vrot.slane %v448_v40, %v973_v2  ;;  %v492_v53 = vrot.slane %v448_v40, %v975_v3 }
 0x185   : > { %v462_v43 = vpop.permute.xlu1 %461 }
 0x186   : > { %v459_v44 = vmul.f32 %v458_v42, %v453_v41  ;;  %v483_v51 = vmul.f32 %v482_v45, %v477_v47 }
 0x188   : > { %v464_v49 = vadd.f32 %v462_v43, %v459_v44 }
 0x18a   : > { %v467_v48 = vpop.permute.xlu1 %466 }
 0x18b   : > { %v473_v50 = vmul.f32 %v472_v46, %v467_v48 }
 0x18d   : > { %v474_v52 = vadd.f32 %v473_v50, %v464_v49  ;;  %v599_v50 = vpop.permute.xlu0 %598 }
 0x18f   : > { %v487_v54 = vpop.permute.xlu1 %486  ;;  %v484_v55 = vadd.f32 %v483_v51, %v474_v52 }
 0x190   : > { %v493_v56 = vmul.f32 %v492_v53, %v487_v54 }
 0x192   : > { %v494_v57 = vadd.f32 %v493_v56, %v484_v55 }
 0x194   : > { %v498_v58 = vpop.permute.xlu1 %497 }
 0x195   : > { %v500_v60 = vmul.f32 %v498_v58, %v494_v57 }
 0x197   : > { %v1017_v61 = vadd.f32 %v500_v60, %v386_v59  ;;  %v624_v59 = vpop.permute.xlu0 %623 }
 0x199   : > { %v503_v62 = vsel %vm502_vm0, %v1017_v61, 0.0  ;;  %v510_v63 = vmul.f32 %v1017_v61, %v1017_v61  ;;  %v533_v22 = vpop.permute.xlu1 %532 }
 0x19a   : > { %v504_v0 = vrot.slane %v503_v62, 4 }
 0x19b   : > { %v511_v1 = vsel %vm502_vm0, %v510_v63, 0.0 }
 0x19c   : > { %v505_v5 = vadd.f32 %v504_v0, %v503_v62  ;;  %v512_v6 = vrot.slane %v511_v1, 4 }
 0x19e   : > { %v513_v8 = vadd.f32 %v512_v6, %v511_v1  ;;  %v506_v9 = vrot.slane %v505_v5, 2  ;;  %v549_v23 = vpop.permute.xlu1 %548 }
 0x1a0   : > { %v514_v10 = vrot.slane %v513_v8, 2  ;;  %v507_v11 = vadd.f32 %v506_v9, %v505_v5 }
 0x1a2   : > { %v515_v12 = vadd.f32 %v514_v10, %v513_v8  ;;  %v508_v13 = vrot.slane %v507_v11, 1 }
 0x1a3   : > { %v554_v30 = vpop.permute.xlu1 %553 }
 0x1a4   : > { %v509_v14 = vadd.f32 %v508_v13, %v507_v11  ;;  %v516_v15 = vrot.slane %v515_v12, 1 }
 0x1a6   : > { %v517_v16 = vadd.f32 %v516_v15, %v515_v12  ;;  %v518_v17 = vmul.f32 0.25, %v509_v14 }
 0x1a8   : > { %v519_v18 = vmul.f32 0.25, %v517_v16  ;;  %v520_v19 = vmul.f32 %v518_v17, %v518_v17  ;;  %v522_v24 = vsub.f32 %v1017_v61, %v518_v17  ;;  %v574_v37 = vpop.permute.xlu1 %573 }
 0x1aa   : > { %v521_v20 = vsub.f32 %v519_v18, %v520_v19 }
 0x1ac   : > { %v523_v21 = vadd.f32 1e-06, %v521_v20 }
 0x1ad   : > { %v590_v43 = vpop.permute.xlu1 %589 }
 0x1ae   : > { %838 = vrsqrt.f32 %v523_v21 }
 0x1b2   : > { %v604_v48 = vpop.permute.xlu1 %603 }
 0x1b7   : > { %v614_v55 = vpop.permute.xlu1 %613 }
 0x1bb   : > { %v839_v25 = vpop.eup %838 }
 0x1bc   : > { %v525_v27 = vmul.f32 %v839_v25, %v522_v24  ;;  %v634_v1 = vpop.permute.xlu1 %633 }
 0x1be   : > { %v530_v28 = vmul.f32 %v528_v26, %v525_v27 }
 0x1c0   : > { %v535_v31 = vadd.f32 %v533_v22, %v530_v28 }
 0x1c2   : > { %v545_v32 = vrot.slane %v535_v31, %v977_v4  ;;  %v559_v33 = vrot.slane %v535_v31, %v973_v2  ;;  %v569_v35 = vrot.slane %v535_v31, %v979_v7  ;;  %v579_v40 = vrot.slane %v535_v31, %v975_v3 }
 0x1c4   : > { %v546_v34 = vmul.f32 %v545_v32, %v540_v29  ;;  %v560_v39 = vmul.f32 %v559_v33, %v554_v30  ;;  %v570_v42 = vmul.f32 %v569_v35, %v564_v36  ;;  %v580_v45 = vmul.f32 %v579_v40, %v574_v37 }
 0x1c6   : > { %v551_v38 = vadd.f32 %v549_v23, %v546_v34 }
 0x1c8   : > { %v561_v41 = vadd.f32 %v560_v39, %v551_v38 }
 0x1ca   : > { %v571_v44 = vadd.f32 %v570_v42, %v561_v41 }
 0x1cc   : > { %v581_v46 = vadd.f32 %v580_v45, %v571_v44 }
 0x1ce   : > { %v583_v47 = vrot.slane %v581_v46, 4 }
 0x1d0   : > { %v585_v49 = vmul.f32 %v583_v47, %v581_v46 }
 0x1d2   : > { %v595_v51 = vrot.slane %v585_v49, %v977_v4  ;;  %v609_v52 = vrot.slane %v585_v49, %v973_v2  ;;  %v619_v54 = vrot.slane %v585_v49, %v979_v7  ;;  %v629_v58 = vrot.slane %v585_v49, %v975_v3 }
 0x1d4   : > { %v596_v53 = vmul.f32 %v595_v51, %v590_v43  ;;  %v610_v57 = vmul.f32 %v609_v52, %v604_v48  ;;  %v620_v62 = vmul.f32 %v619_v54, %v614_v55  ;;  %v630_v63 = vmul.f32 %v629_v58, %v624_v59 }
 0x1d6   : > { %v601_v56 = vadd.f32 %v599_v50, %v596_v53 }
 0x1d8   : > { %v611_v60 = vadd.f32 %v610_v57, %v601_v56 }
 0x1da   : > { %v621_v0 = vadd.f32 %v620_v62, %v611_v60 }
 0x1dc   : > { %v631_v5 = vadd.f32 %v630_v63, %v621_v0 }
 0x1de   : > { %v636_v6 = vmul.f32 %v634_v1, %v631_v5 }
 0x1e0   : > { %v637_v2 = vadd.f32 %v636_v6, %v1017_v61 }
 0x1e2   : > { %638 = vst [vmem:[%s384_s24] sm:$0xf] %v637_v2 }
 0x1e3 PF: > { %s18_s9 = sadd.s32 1, %s878_s9   ;;  %s1060_s27 = smov %s870_s29 }
 0x1e4   : > { %p15_p7 = scmp.ge.s32.totalorder %s18_s9, 6   ;;  %s1061_s28 = smov %s874_s30 }
 0x1e5   : > { %s1062_s29 = smov %s1065_s10  ;;  %s1063_s30 = smov %s1069_s11 }
 0x1e6   :  { %17 = sbr.rel (!%p15_p7) target bundleno = 3 (0x3), region = 88 }

// kernel: nafblock_forward.2
= control target key start
LH: loop header
LB: loop body
LE: loop exit
PB: predicated region body
PF: predicated region fallthrough
CT: control target
= control target key end

     0   :  { %s1836_s0 = inlined_call_operand.vmem [shape: f32[2,4,256], index: 0, kind: input, shape index: {}]   ;;  %s1837_s1 = inlined_call_operand.vmem [shape: f32[2,4,16,16], index: 1, kind: input, shape index: {}, may-alias: {1,2}]   ;;  %s1838_s2 = inlined_call_operand.vmem [shape: f32[2,4,16,16], index: 2, kind: input, shape index: {}, may-alias: {1,2}]   ;;  %s1839_s3 = inlined_call_operand.vmem [shape: f32[9,128], index: 3, kind: input, shape index: {}]   ;;  %s1840_s4 = inlined_call_operand.vmem [shape: f32[4,6], index: 4, kind: input, shape index: {}]   ;;  %s1841_s5 = inlined_call_operand.vmem [shape: f32[8,5], index: 5, kind: input, shape index: {}]   ;;  %s1842_s6 = inlined_call_operand.vmem [shape: f32[8,10], index: 6, kind: input, shape index: {}]   ;;  %s1843_s7 = inlined_call_operand.vmem [shape: f32[2,4,256], index: 7, kind: output, shape index: {0}]   ;;  %s1844_s8 = inlined_call_operand.vmem [shape: f32[2,4,1], index: 8, kind: output, shape index: {1}]  }
   0x1   :  { %1846 = sst [smem:[#allocation5_spill]] %s1837_s1 }
   0x2   :  { %s1432_s27 = smov 0   ;;  %s1434_s28 = smov 0  }
   0x3   :  { %s1436_s29 = smov 0   ;;  %s1438_s30 = smov 0  }
   0x4   :  { %s1440_s9 = smov 0   ;;  %s1442_s10 = smov 0  }
   0x5   :  { %s1444_s11 = smov 0   ;;  %s1446_s12 = smov 0  }
   0x6   :  { %s1448_s13 = smov 0  }
   0x7 LB: > { %s28_s14 = sadd.s32 1, %s1358_s11  ;;  %s31_s15 = sadd.s32 1, %s1362_s12  ;;  %s1366_s13 = sphi %s1448_s13, %s19_s13   ;;  %s1362_s12 = sphi %s1446_s12, %s1858_s12   ;;  %s1358_s11 = sphi %s1444_s11, %s1857_s11   ;;  %s1354_s10 = sphi %s1442_s10, %s1856_s10   ;;  %s1350_s9 = sphi %s1440_s9, %s1855_s9   ;;  %s1346_s30 = sphi %s1438_s30, %s1854_s30   ;;  %s1342_s29 = sphi %s1436_s29, %s1853_s29   ;;  %s1338_s28 = sphi %s1434_s28, %s1852_s28   ;;  %s1334_s27 = sphi %s1432_s27, %s1851_s27  }
   0x8   : > { %p29_p0 = scmp.ge.s32.totalorder %s28_s14, 2  ;;  %s74_s16 = sadd.s32 1, %s1346_s30 }
   0x9   : > { %p81_p2 = scmp.ne.s32.totalorder %s1346_s30, %s1342_s29  ;;  %p82_p3 = scmp.eq.s32.totalorder %s1366_s13, 0 }
   0xa   : > { %s1860_s14 = smov (%p29_p0, %s28_s14), 0  ;;  %s1862_s15 = smov (!%p29_p0, %s31_s15), %s1362_s12 }
   0xb   : > { %p33_p1 = scmp.ge.s32.totalorder %s1862_s15, 2  ;;  %p83_p4 = por %p82_p3, %p81_p2 }
   0xc   : > { %p115_p6 = scmp.ne.s32.totalorder %s1338_s28, %s1334_s27  ;;  %s108_s20 = sadd.s32 1, %s1338_s28 }
   0xd   : > { %s1864_s15 = smov (%p33_p1, %s1862_s15), 0  ;;  %p1157_p8 = scmp.ge.s32.totalorder %s1366_s13, 4 }
   0xe   : > { %1847 = sst [smem:[#allocation4_spill]] %s1864_s15  ;;  %s69_s17 = ssub.s32 %s1362_s12, %s1864_s15 }
   0xf   : > { %p72_p5 = scmp.eq.s32.totalorder %s69_s17, 0  ;;  %p1495_p7 = por %p115_p6, %p82_p3 }
  0x10   : > { %291 = sbr.rel (%p1157_p8) target bundleno = 40 (0x28), region = 32 }
  0x11   : > { %s1491_s18 = scalar_select %p72_p5, %s1346_s30, %s74_s16  }
  0x12   : > { %s1501_s21 = scalar_select %p72_p5, %s1338_s28, %s108_s20  }
  0x15   : > { %305 = sbr.rel (!%p83_p4) target bundleno = 33 (0x21), region = 40  ;;  %s307_s22 = sand.u32 (%p83_p4), 1, %s1346_s30  }
  0x16   : > { %s1158_s23 = sshll.u32 (%p83_p4), %s307_s22, 5  ;;  %s1328_s24 = sshll.u32 (%p83_p4), %s1362_s12, 6 }
  0x17   : > { %s1849_s1 = sld [smem:[#allocation5_spill]] (%p83_p4)  ;;  %s309_s17 = scalar_lea.vmem (%p83_p4), [#allocation2], %s1158_s23 }
  0x1d   : > { %s316_s16 = scalar_lea.vmem %s1849_s1, %s1328_s24 }
  0x1e   : > { %v351_v0 = vld [vmem:[%s316_s16] sm:$0xff]  ;;  %v353_v1 = vld [vmem:[%s316_s16 + $0x10] sm:$0xff] }
  0x1f   : > { %v355_v2 = vld [vmem:[%s316_s16 + $0x20] sm:$0xff]  ;;  %352 = vst [vmem:[%s309_s17] sm:$0xff] %v351_v0  ;;  %354 = vst [vmem:[%s309_s17 + $0x8] sm:$0xff] %v353_v1  ;;  %v357_v3 = vld [vmem:[%s316_s16 + $0x30] sm:$0xff] }
  0x20   : > { %356 = vst [vmem:[%s309_s17 + $0x10] sm:$0xff] %v355_v2  ;;  %358 = vst [vmem:[%s309_s17 + $0x18] sm:$0xff] %v357_v3 }
  0x21 PF: > { %364 = sbr.rel (!%p1495_p7) target bundleno = 40 (0x28), region = 78  ;;  %s366_s20 = sand.u32 (%p1495_p7), 1, %s1338_s28  }
  0x22   : > { %s1162_s22 = sshll.u32 (%p1495_p7), %s366_s20, 5  ;;  %s1331_s15 = sshll.u32 (%p1495_p7), %s1362_s12, 6 }
  0x23   : > { %s1330_s25 = sadd.s32 (%p1495_p7), 8, %s1331_s15  ;;  %s368_s23 = scalar_lea.vmem (%p1495_p7), [#allocation3], %s1162_s22 }
  0x24   : > { %s375_s1 = scalar_lea.vmem (%p1495_p7), %s1838_s2, %s1330_s25 }
  0x25   : > { %v410_v4 = vld [vmem:[%s375_s1] sm:$0xff] (%p1495_p7)  ;;  %v412_v5 = vld [vmem:[%s375_s1 + $0x10] sm:$0xff] (%p1495_p7) }
  0x26   : > { %v414_v6 = vld [vmem:[%s375_s1 + $0x20] sm:$0xff]  ;;  %411 = vst [vmem:[%s368_s23] sm:$0xff] %v410_v4  ;;  %413 = vst [vmem:[%s368_s23 + $0x8] sm:$0xff] %v412_v5  ;;  %v416_v7 = vld [vmem:[%s375_s1 + $0x30] sm:$0xff] }
  0x27   : > { %415 = vst [vmem:[%s368_s23 + $0x10] sm:$0xff] %v414_v6  ;;  %417 = vst [vmem:[%s368_s23 + $0x18] sm:$0xff] %v416_v7 }
  0x28 PF: > { %p1165_p9 = scmp.ge.s32.totalorder %s1366_s13, 1  ;;  %p422_p10 = scmp.lt.s32.totalorder %s1366_s13, 5 }
  0x2a   : > { %p423_p11 = pnand %p1165_p9, %p422_p10 }
  0x2b   : > { %p488_p12 = scmp.lt.s32.totalorder (!%p423_p11), %s1354_s10, 1  ;;  %s436_s23 = sand.u32 (!%p423_p11), 1, %s1334_s27  }
  0x2c   : > { %426 = sbr.rel (%p423_p11) target bundleno = 587 (0x24b), region = 116  ;;  %s1167_s15 = sshll.u32 (!%p423_p11), %s436_s23, 5 }
  0x2d   : > { %s438_s19 = scalar_lea.vmem (!%p423_p11), [#allocation3], %s1167_s15  ;;  %p490_p13 = scmp.lt.s32.totalorder (!%p423_p11), %s1350_s9, 1 }
  0x2e   : > { %s1376_s23 = smov (!%p423_p11), 127   ;;  %s1377_s15 = smov (!%p423_p11), 1  }
  0x2f   : > { %s1385_s22 = smov (!%p423_p11), 111   ;;  %p840_p0 = scmp.gt.s32.totalorder (!%p423_p11), %s1350_s9, 0 }
  0x30   : > { %p1174_p1 = scmp.ne.s32.totalorder (!%p423_p11), %s1350_s9, 0 }
  0x31   : > { %v515_v8 = vld [vmem:[%s1841_s5] sm:$0xff]  ;;  %v1368_v10 = vmov 0   ;;  %v1369_v11 = vmov 4   ;;  %v1370_v12 = vmov 1   ;;  %s1866_s10 = smov (!%p488_p12, %s1354_s10), 1  ;;  %v1371_v13 = vmov 2  }
  0x32   : > { %v514_v9 = vld [vmem:[%s1840_s4] sm:$0xf]  ;;  %1270 = vset.pattern.permute.xlu1 %v1368_v10  ;;  %1268 = vset.pattern.permute.xlu0 %v1368_v10  ;;  %s1172_s1 = sshll.u32 %s1866_s10, 2  ;;  %v1372_v15 = vmov 3   ;;  %v1373_v16 = vmov 7   ;;  %v1374_v17 = vmov 6  }
  0x33   : > { %557 = vperm.xlu1 %1270, %v515_v8   ;;  %546 = vperm.xlu0 %1268, %v514_v9   ;;  %s1533_s25 = scalar_lea.vmem %s1844_s8, %s1172_s1  ;;  %v1540_v14 = vld [vmem:[%s1842_s6] sm:$0xff]  ;;  %v1375_v18 = vmov 8   ;;  %v1547_v19 = vld [vmem:[%s438_s19 + $0x8] sm:$0x1]  ;;  %v1549_v20 = vld [vmem:[%s438_s19 + $0x10] sm:$0x1] }
  0x34   : > { %v853_v21 = vrot.slane %v1547_v19, 7  ;;  %v868_v22 = vmul.f32 %v1547_v19, %v1547_v19  ;;  %vm719_vm0 = vcmask 1041409   ;;  %v1555_v23 = vld [vmem:[%s438_s19] sm:$0x1]  ;;  %v1557_v24 = vld [vmem:[%s438_s19 + $0x18] sm:$0x1]  ;;  %v869_v26 = vmul.f32 %v1549_v20, %v1549_v20 }
  0x35   : > { %v855_v25 = vrot.slane %v1549_v20, 6  ;;  %vm722_vm1 = vcmask 1042434   ;;  %v867_v28 = vmul.f32 %v1555_v23, %v1555_v23  ;;  %s491_s27 = scalar_select %p490_p13, %s1350_s9, 1  ;;  %v857_v30 = vrot.slane %v1557_v24, 5 }
  0x36   : > { %v854_v27 = vsel %vm719_vm0, %v853_v21, %v1555_v23  ;;  %v875_v29 = vrot.slane %v868_v22, 7  ;;  %s1168_s16 = sshll.u32 %s1866_s10, 1  ;;  %v870_v31 = vmul.f32 %v1557_v24, %v1557_v24  ;;  %vm725_vm2 = vcmask 1043459   ;;  %s429_s10 = sand.u32 1, %s1342_s29  }
  0x37   : > { %1271 = vset.pattern.permute.xlu1 %v1369_v11  ;;  %1269 = vset.pattern.permute.xlu0 %v1370_v12  ;;  %v856_v32 = vsel %vm722_vm1, %v855_v25, %v854_v27  ;;  %v877_v33 = vrot.slane %v869_v26, 6  ;;  %s1575_s17 = sadd.s32 %s1168_s16, %s491_s27  ;;  %vm728_vm3 = vcmask 125952   ;;  %s1166_s20 = sshll.u32 %s429_s10, 5  ;;  %vm520_vm4 = vcmask 1043456  }
  0x38   : > { %566 = vperm.xlu1 %1271, %v515_v8   ;;  %551 = vperm.xlu0 %1269, %v514_v9   ;;  %v876_v34 = vsel %vm719_vm0, %v875_v29, %v867_v28  ;;  %v858_v35 = vsel %vm725_vm2, %v857_v30, %v856_v32  ;;  %v879_v36 = vrot.slane %v870_v31, 5  ;;  %s1169_s1 = sshll.u32 %s1575_s17, 2  ;;  %s431_s29 = scalar_lea.vmem [#allocation2], %s1166_s20  ;;  %vm833_vm5 = vcmask 121856  }
  0x39   : > { %v878_v37 = vsel %vm722_vm1, %v877_v33, %v876_v34  ;;  %v860_v38 = vsel %vm728_vm3, %v858_v35, 0.0  ;;  %s495_s26 = scalar_lea.vmem %s1836_s0, %s1169_s1  ;;  %v1591_v43 = vld [vmem:[%s431_s29 + $0xf] sm:$0x1]  ;;  %v1597_v48 = vld [vmem:[%s431_s29 + $0x7] sm:$0x1]  ;;  %s1378_s19 = smov 15  }
  0x3a   : > { %v880_v39 = vsel %vm725_vm2, %v879_v36, %v878_v37  ;;  %v861_v40 = vrot.slane %v860_v38, 4  ;;  %v1589_v42 = vld [vmem:[%s495_s26] sm:$0xf]  ;;  %v718_v49 = vrot.slane %v1591_v43, 7  ;;  %v737_v50 = vmul.f32 %v1591_v43, %v1591_v43  ;;  %v1602_v52 = vld [vmem:[%s431_s29 + $0x17] sm:$0x1] }
  0x3b   : > { %v882_v41 = vsel %vm728_vm3, %v880_v39, 0.0  ;;  %v521_v46 = vsel %vm520_vm4, %v1589_v42, 0.0  ;;  %v528_v47 = vmul.f32 %v1589_v42, %v1589_v42  ;;  %v736_v56 = vmul.f32 %v1597_v48, %v1597_v48  ;;  %v1607_v57 = vld [vmem:[%s431_s29 + $0x1f] sm:$0x1]  ;;  %s1381_s27 = smov 113   ;;  %s1382_s16 = smov 17  }
  0x3c   : > { %1272 = vset.pattern.permute.xlu1 %v1370_v12  ;;  %1273 = vset.pattern.permute.xlu0 %v1371_v13  ;;  %v862_v44 = vadd.f32 %v861_v40, %v860_v38  ;;  %v883_v45 = vrot.slane %v882_v41, 4  ;;  %v522_v51 = vrot.slane %v521_v46, 4  ;;  %v720_v58 = vsel %vm719_vm0, %v718_v49, %v1597_v48  ;;  %s1383_s10 = smov 112   ;;  %s1384_s20 = smov 16  }
  0x3d   : > { %571 = vperm.xlu1 %1272, %v515_v8   ;;  %581 = vperm.xlu0 %1273, %v515_v8   ;;  %v529_v55 = vsel %vm520_vm4, %v528_v47, 0.0  ;;  %v721_v59 = vrot.slane %v1602_v52, 6  ;;  %v738_v60 = vmul.f32 %v1602_v52, %v1602_v52  ;;  %v744_v61 = vrot.slane %v737_v50, 7  ;;  %s958_s24 = scalar_select %p490_p13, 1, 0 }
  0x3e   : > { %v863_v53 = vrot.slane %v862_v44, 2  ;;  %v884_v54 = vadd.f32 %v883_v45, %v882_v41  ;;  %v523_v62 = vadd.f32 %v522_v51, %v521_v46  ;;  %v530_v63 = vrot.slane %v529_v55, 4 }
  0x3f   : > { %v724_v2 = vrot.slane %v1607_v57, 5  ;;  %v723_v3 = vsel %vm722_vm1, %v721_v59, %v720_v58  ;;  %v739_v4 = vmul.f32 %v1607_v57, %v1607_v57  ;;  %v745_v5 = vsel %vm719_vm0, %v744_v61, %v736_v56  ;;  %s959_s26 = scvt.s32.f32 %s958_s24 }
  0x40   : > { %v864_v0 = vadd.f32 %v863_v53, %v862_v44  ;;  %v885_v1 = vrot.slane %v884_v54, 2  ;;  %v746_v6 = vrot.slane %v738_v60, 6  ;;  %v524_v7 = vrot.slane %v523_v62, 2 }
  0x41   : > { %1274 = vset.pattern.permute.xlu1 %v1372_v15  ;;  %1276 = vset.pattern.permute.xlu0 %v1373_v16  ;;  %vm828_vm6 = vcmask 7168   ;;  %vm962_vm7 = vcmask 130048   ;;  %vm969_vm8 = vcmask 916480  }
  0x42   : > { %591 = vperm.xlu1 %1274, %v515_v8   ;;  %692 = vperm.xlu0 %1276, %v1540_v14   ;;  %v531_v8 = vadd.f32 %v530_v63, %v529_v55  ;;  %v865_v9 = vrot.slane %v864_v0, 1  ;;  %v747_v16 = vsel %vm722_vm1, %v746_v6, %v745_v5 }
  0x44   : > { %v532_v21 = vrot.slane %v531_v8, 2  ;;  %v866_v22 = vadd.f32 %v865_v9, %v864_v0 }
  0x46   : > { %1275 = vset.pattern.permute.xlu1 %v1374_v17  ;;  %1279 = vset.pattern.permute.xlu0 %v1368_v10  ;;  %v886_v10 = vadd.f32 %v885_v1, %v884_v54  ;;  %v748_v17 = vrot.slane %v739_v4, 5  ;;  %v533_v29 = vadd.f32 %v532_v21, %v531_v8  ;;  %v889_v31 = vmul.f32 0.25, %v866_v22 }
  0x47   : > { %679 = vperm.xlu1 %1275, %v1540_v14   ;;  %v560_v54 = vlaneseq }
  0x48   : > { %v887_v25 = vrot.slane %v886_v10, 1  ;;  %v749_v27 = vsel %vm725_vm2, %v748_v17, %v747_v16  ;;  %v534_v35 = vrot.slane %v533_v29, 1  ;;  %v891_v37 = vmul.f32 %v889_v31, %v889_v31 }
  0x49   : > { %v751_v33 = vsel %vm728_vm3, %v749_v27, 0.0  ;;  %v1624_v59 = vshrl.u32 %v560_v54, 7 }
  0x4a   : > { %v888_v30 = vadd.f32 %v887_v25, %v886_v10  ;;  %v752_v39 = vrot.slane %v751_v33, 4  ;;  %v535_v40 = vadd.f32 %v534_v35, %v533_v29 }
  0x4b   : > { %1277 = vset.pattern.permute.xlu1 %v1375_v18  ;;  %v525_v18 = vadd.f32 %v524_v7, %v523_v62  ;;  %v1627_v63 = vsub.s32 0, %v1624_v59  ;;  %v576_v54 = vsub.s32 1, %v1624_v59 }
  0x4c   : > { %705 = vperm.xlu1 %1277, %v1540_v14   ;;  %v890_v36 = vmul.f32 0.25, %v888_v30  ;;  %v753_v46 = vadd.f32 %v752_v39, %v751_v33  ;;  %v537_v47 = vmul.f32 0.25, %v535_v40 }
  0x4d   : > { %v526_v28 = vrot.slane %v525_v18, 1 }
  0x4e   : > { %v892_v44 = vsub.f32 %v890_v36, %v891_v37  ;;  %v754_v53 = vrot.slane %v753_v46, 2 }
  0x4f   : > { %v527_v34 = vadd.f32 %v526_v28, %v525_v18 }
  0x50   : > { %1278 = vset.pattern.permute.xlu1 %v1369_v11  ;;  %v726_v11 = vsel %vm725_vm2, %v724_v2, %v723_v3  ;;  %v901_v50 = vadd.f32 1e-06, %v892_v44  ;;  %v755_v58 = vadd.f32 %v754_v53, %v753_v46  ;;  %v896_v2 = vrot.slane %v889_v31, %v1627_v63 }
  0x51   : > { %v729_v26 = vsel %vm728_vm3, %v726_v11, 0.0  ;;  %v536_v41 = vmul.f32 0.25, %v527_v34 }
  0x52   : > { %v730_v32 = vrot.slane %v729_v26, 4  ;;  %1286 = vrsqrt.f32 %v901_v50  ;;  %v756_v62 = vrot.slane %v755_v58, 1  ;;  %v897_v6 = vsub.f32 %v1555_v23, %v896_v2 }
  0x53   : > { %v538_v49 = vmul.f32 %v536_v41, %v536_v41  ;;  %v898_v9 = vsub.f32 %v1547_v19, %v896_v2  ;;  %v540_v16 = vsub.f32 %v1589_v42, %v536_v41  ;;  %v899_v18 = vsub.f32 %v1549_v20, %v896_v2 }
  0x54   : > { %v731_v38 = vadd.f32 %v730_v32, %v729_v26  ;;  %v757_v0 = vadd.f32 %v756_v62, %v755_v58  ;;  %v900_v42 = vsub.f32 %v1557_v24, %v896_v2 }
  0x55   : > { %v539_v55 = vsub.f32 %v537_v47, %v538_v49 }
  0x56   : > { %v732_v45 = vrot.slane %v731_v38, 2  ;;  %v759_v4 = vmul.f32 0.25, %v757_v0 }
  0x57   : > { %v541_v60 = vadd.f32 1e-06, %v539_v55 }
  0x58   : > { %v733_v51 = vadd.f32 %v732_v45, %v731_v38 }
  0x59   : > { %1288 = vrsqrt.f32 %v541_v60 }
  0x5a   : > { %v734_v56 = vrot.slane %v733_v51, 1 }
  0x5c   : > { %v735_v61 = vadd.f32 %v734_v56, %v733_v51 }
  0x5e   : > { %v758_v1 = vmul.f32 0.25, %v735_v61 }
  0x5f   : > { %v1287_v3 = vpop.eup %1286 }
  0x60   : > { %v760_v5 = vmul.f32 %v758_v1, %v758_v1  ;;  %v906_v7 = vrot.slane %v1287_v3, %v1627_v63  ;;  %v765_v2 = vrot.slane %v758_v1, %v1627_v63 }
  0x62   : > { %v761_v8 = vsub.f32 %v759_v4, %v760_v5  ;;  %v907_v17 = vmul.f32 %v906_v7, %v897_v6  ;;  %v908_v26 = vmul.f32 %v906_v7, %v898_v9  ;;  %v909_v19 = vmul.f32 %v906_v7, %v899_v18 }
  0x63   : > { %v910_v38 = vmul.f32 %v906_v7, %v900_v42  ;;  %v586_v7 = vsub.s32 2, %v1624_v59  ;;  %v766_v9 = vsub.f32 %v1597_v48, %v765_v2 }
  0x64   : > { %v770_v22 = vadd.f32 1e-06, %v761_v8 }
  0x66   : > { %v1289_v21 = vpop.eup %1288  ;;  %1290 = vrsqrt.f32 %v770_v22 }
  0x67   : > { %v543_v23 = vmul.f32 %v1289_v21, %v540_v16  ;;  %v596_v21 = vsub.s32 3, %v1624_v59 }
  0x73   : > { %v1291_v5 = vpop.eup %1290 }
  0x74   : > { %v775_v16 = vrot.slane %v1291_v5, %v1627_v63 }
  0x76   : > { %v776_v48 = vmul.f32 %v775_v16, %v766_v9 }
  0xae   : > { %v1633_v10 = vpop.permute.xlu1 %557  ;;  %v1635_v11 = vpop.permute.xlu0 %546 }
  0xaf   : > { %v780_v25 = vrot.slane %v1635_v11, 1  ;;  %v911_v27 = vmul.f32 %v907_v17, %v1635_v11  ;;  %v781_v28 = vrot.slane %v1635_v11, 2  ;;  %v549_v34 = vmul.f32 %v1635_v11, %v543_v23 }
  0xb0   : > { %v782_v37 = vrot.slane %v1635_v11, 3 }
  0xb1   : > { %v912_v32 = vmul.f32 %v908_v26, %v780_v25  ;;  %v913_v35 = vmul.f32 %v909_v19, %v781_v28  ;;  %v767_v26 = vsub.f32 %v1591_v43, %v765_v2  ;;  %v786_v19 = vmul.f32 %v776_v48, %v1635_v11 }
  0xb2   : > { %v914_v53 = vmul.f32 %v910_v38, %v782_v37 }
  0xb3   : > { %v1642_v29 = vpop.permute.xlu1 %566  ;;  %v1644_v30 = vpop.permute.xlu0 %551  ;;  %v777_v42 = vmul.f32 %v775_v16, %v767_v26 }
  0xb4   : > { %v915_v20 = vadd.f32 %v911_v27, %v1644_v30  ;;  %v790_v31 = vrot.slane %v1644_v30, 1  ;;  %v791_v33 = vrot.slane %v1644_v30, 2  ;;  %v554_v39 = vadd.f32 %v1644_v30, %v549_v34 }
  0xb5   : > { %v792_v46 = vrot.slane %v1644_v30, 3  ;;  %v796_v43 = vadd.f32 %v786_v19, %v1644_v30  ;;  %v768_v34 = vsub.f32 %v1602_v52, %v765_v2  ;;  %v1379_v52 = vmov 9  }
  0xb6   : > { %v916_v36 = vadd.f32 %v912_v32, %v790_v31  ;;  %v922_v24 = vrot.slane %v915_v20, %v1627_v63  ;;  %v917_v41 = vadd.f32 %v913_v35, %v791_v33  ;;  %v563_v55 = vrot.slane %v554_v39, %v1627_v63 }
  0xb7   : > { %v918_v60 = vadd.f32 %v914_v53, %v792_v46  ;;  %v577_v4 = vrot.slane %v554_v39, %v576_v54  ;;  %v587_v18 = vrot.slane %v554_v39, %v586_v7  ;;  %v597_v27 = vrot.slane %v554_v39, %v596_v21 }
  0xb8   : > { %v1660_v40 = vpop.permute.xlu1 %571  ;;  %v923_v44 = vmul.f32 %v922_v24, %v1633_v10  ;;  %v928_v45 = vrot.slane %v916_v36, %v1627_v63  ;;  %v1667_v47 = vpop.permute.xlu0 %581  ;;  %v934_v51 = vrot.slane %v917_v41, %v1627_v63  ;;  %v564_v3 = vmul.f32 %v563_v55, %v1633_v10 }
  0xb9   : > { %v940_v0 = vrot.slane %v918_v60, %v1627_v63  ;;  %v578_v1 = vmul.f32 %v577_v4, %v1660_v40  ;;  %v588_v23 = vmul.f32 %v587_v18, %v1667_v47  ;;  %v787_v35 = vmul.f32 %v780_v25, %v777_v42 }
  0xba   : > { %v924_v49 = vadd.f32 %v923_v44, %v1642_v29  ;;  %v929_v50 = vmul.f32 %v928_v45, %v1660_v40  ;;  %v935_v58 = vmul.f32 %v934_v51, %v1667_v47  ;;  %v569_v17 = vadd.f32 %v1642_v29, %v564_v3 }
  0xbb   : > { %v769_v24 = vsub.f32 %v1607_v57, %v765_v2  ;;  %v778_v38 = vmul.f32 %v775_v16, %v768_v34  ;;  %v1380_v41 = vmov 5   ;;  %v662_v19 = vsub.s32 5, %v1624_v59 }
  0xbc   : > { %v930_v56 = vadd.f32 %v929_v50, %v924_v49  ;;  %v579_v22 = vadd.f32 %v578_v1, %v569_v17 }
  0xbd   : > { %v1679_v61 = vpop.permute.xlu1 %591  ;;  %v788_v57 = vmul.f32 %v781_v28, %v778_v38  ;;  %v1764_v50 = vpop.permute.xlu0 %692 }
  0xbe   : > { %v936_v62 = vadd.f32 %v935_v58, %v930_v56  ;;  %v941_v6 = vmul.f32 %v940_v0, %v1679_v61  ;;  %v589_v20 = vadd.f32 %v588_v23, %v579_v22  ;;  %v598_v32 = vmul.f32 %v597_v27, %v1679_v61 }
  0xc0   : > { %v1688_v8 = vadd.f32 %v941_v6, %v936_v62  ;;  %v1717_v36 = vadd.f32 %v598_v32, %v589_v20  ;;  %v960_v62 = vstv %s959_s26  ;;  %v675_v20 = vsub.s32 6, %v1624_v59 }
  0xc2   : > { %948 = vrot.lane.b32.xlu0 %v1688_v8, %s1376_s23  ;;  %944 = vrot.lane.b32.xlu1 %v1688_v8, %s1377_s15 }
  0xc6   : > { %614 = vperm.xlu0 %1279, %v1540_v14   ;;  %602 = vperm.xlu1 %1278, %v1540_v14  }
  0xca   : > { %1281 = vset.pattern.permute.xlu0 %v1371_v13  ;;  %1280 = vset.pattern.permute.xlu1 %v1370_v12  ;;  %v797_v13 = vadd.f32 %v790_v31, %v787_v35  ;;  %v803_v12 = vrot.slane %v796_v43, %v1627_v63  ;;  %v779_v31 = vmul.f32 %v775_v16, %v769_v24 }
  0xcb   : > { %640 = vperm.xlu0 %1281, %v1540_v14   ;;  %627 = vperm.xlu1 %1280, %v1540_v14  }
  0xcc   : > { %v804_v25 = vmul.f32 %v803_v12, %v1633_v10  ;;  %v809_v39 = vrot.slane %v797_v13, %v1627_v63  ;;  %v789_v45 = vmul.f32 %v782_v37, %v779_v31 }
  0xce   : > { %v805_v44 = vadd.f32 %v804_v25, %v1642_v29  ;;  %v810_v10 = vmul.f32 %v809_v39, %v1660_v40  ;;  %v799_v49 = vadd.f32 %v792_v46, %v789_v45  ;;  %v1760_v46 = vpop.permute.xlu1 %679 }
  0xcf   : > { %632 = vrot.lane.b32.xlu0 %v1717_v36, %s1378_s19  ;;  %1282 = vset.pattern.permute.xlu1 %v1372_v15  ;;  %v798_v15 = vadd.f32 %v791_v33, %v788_v57 }
  0xd0   : > { %653 = vperm.xlu1 %1282, %v1540_v14   ;;  %1285 = vset.pattern.permute.xlu0 %v1379_v52  ;;  %v811_v33 = vadd.f32 %v810_v10, %v805_v44  ;;  %v821_v29 = vrot.slane %v799_v49, %v1627_v63 }
  0xd1   : > { %v815_v28 = vrot.slane %v798_v15, %v1627_v63 }
  0xd2   : > { %v822_v30 = vmul.f32 %v821_v29, %v1679_v61 }
  0xd3   : > { %645 = vrot.lane.b32.xlu0 %v1717_v36, %s1377_s15  ;;  %v816_v11 = vmul.f32 %v815_v28, %v1667_v47  ;;  %v1762_v47 = vpop.permute.xlu1 %705 }
  0xd4   : > { %1283 = vset.pattern.permute.xlu1 %v1380_v41 }
  0xd5   : > { %666 = vperm.xlu1 %1283, %v1540_v14   ;;  %v817_v37 = vadd.f32 %v816_v11, %v811_v33 }
  0xd7   : > { %671 = vrot.lane.b32.xlu0 %v1717_v36, %s1381_s27  ;;  %v1753_v40 = vadd.f32 %v822_v30, %v817_v37 }
  0xd9   : > { %606 = vrot.lane.b32.xlu1 %v1717_v36, %s1382_s16 }
  0xda   : > { %1284 = vset.pattern.permute.xlu1 %v1379_v52 }
  0xdb   : > { %684 = vrot.lane.b32.xlu0 %v1717_v36, %s1383_s10 }
  0xdd   : > { %619 = vrot.lane.b32.xlu1 %v1717_v36, %s1384_s20 }
  0xdf   : > { %697 = vrot.lane.b32.xlu0 %v1717_v36, %s1385_s22  ;;  %s509_s22 = scalar_lea.vmem %s1843_s7, %s1169_s1 }
  0xe1   : > { %658 = vrot.lane.b32.xlu1 %v1717_v36, %s1376_s23 }
  0xe5   : > { %825 = vrot.lane.b32.xlu1 %v1753_v40, %s1377_s15  ;;  %s841_s15 = scalar_select %p840_p0, 1, 0 }
  0xe7   : > { %s842_s16 = scvt.s32.f32 %s841_s15 }
  0xe9   : > { %830 = vrot.lane.b32.xlu1 %v1753_v40, %s1376_s23 }
  0xed   : > { %973 = vperm.xlu1 %1284, %v1540_v14   ;;  %v953_v14 = vmul.f32 %v1688_v8, %v1764_v50  ;;  %v517_v8 = vld [vmem:[%s1839_s3] sm:$0xff] }
  0xee   : > { %v611_v18 = vrot.slane %v517_v8, %v1627_v63  ;;  %v637_v26 = vrot.slane %v517_v8, %v586_v7  ;;  %v624_v27 = vrot.slane %v517_v8, %v576_v54  ;;  %v650_v42 = vrot.slane %v517_v8, %v596_v21 }
  0xef   : > { %v688_v63 = vsub.s32 7, %v1624_v59  ;;  %v663_v24 = vrot.slane %v517_v8, %v662_v19  ;;  %v676_v54 = vrot.slane %v517_v8, %v675_v20 }
  0xf1   : > { %v689_v21 = vrot.slane %v517_v8, %v688_v63 }
 0x134   : > { %v949_v51 = vpop.permute.xlu0 %948  ;;  %v945_v53 = vpop.permute.xlu1 %944 }
 0x135   : > { %v951_v55 = vsel %vm833_vm5, %v949_v51, 0.0  ;;  %v947_v56 = vsel %vm828_vm6, 0.0, %v945_v53 }
 0x136   : > { %v952_v58 = vmul.f32 %v947_v56, %v1760_v46  ;;  %v955_v60 = vmul.f32 %v951_v55, %v1762_v47 }
 0x138   : > { %v954_v61 = vadd.f32 %v953_v14, %v952_v58 }
 0x13a   : > { %v956_v0 = vadd.f32 %v955_v60, %v954_v61 }
 0x13c   : > { %v961_v2 = vmul.f32 %v960_v62, %v956_v0  ;;  %v843_v62 = vstv %s842_s16 }
 0x13e   : > { %966 = vrot.lane.b32.xlu0 %v961_v2, %s1383_s10 }
 0x141   : > { %v603_v3 = vpop.permute.xlu1 %602  ;;  %v615_v4 = vpop.permute.xlu0 %614 }
 0x142   : > { %v605_v34 = vmul.f32 %v603_v3, %v1717_v36  ;;  %v1173_v36 = vld [vmem:[%s1839_s3 + $0x8] ss:$0 sm:$0xff] }
 0x146   : > { %v641_v5 = vpop.permute.xlu0 %640  ;;  %v628_v6 = vpop.permute.xlu1 %627 }
 0x147   : > { %v836_v51 = vmul.f32 %v1753_v40, %v628_v6 }
 0x14a   : > { %v633_v9 = vpop.permute.xlu0 %632 }
 0x14b   : > { %v654_v16 = vpop.permute.xlu1 %653  ;;  %v638_v35 = vmul.f32 %v637_v26, %v633_v9 }
 0x14d   : > { %v643_v39 = vmul.f32 %v641_v5, %v638_v35 }
 0x14e   : > { %v646_v17 = vpop.permute.xlu0 %645 }
 0x14f   : > { %v651_v12 = vmul.f32 %v650_v42, %v646_v17 }
 0x150   : > { %v667_v1 = vpop.permute.xlu1 %666 }
 0x151   : > { %v656_v41 = vmul.f32 %v654_v16, %v651_v12 }
 0x152   : > { %v672_v48 = vpop.permute.xlu0 %671 }
 0x153   : > { %v677_v15 = vmul.f32 %v676_v54, %v672_v48 }
 0x154   : > { %v607_v22 = vpop.permute.xlu1 %606 }
 0x155   : > { %v612_v23 = vmul.f32 %v611_v18, %v607_v22  ;;  %v682_v29 = vmul.f32 %v1760_v46, %v677_v15 }
 0x156   : > { %v685_v13 = vpop.permute.xlu0 %684 }
 0x157   : > { %v617_v32 = vmul.f32 %v615_v4, %v612_v23  ;;  %v690_v45 = vmul.f32 %v689_v21, %v685_v13 }
 0x158   : > { %v620_v43 = vpop.permute.xlu1 %619 }
 0x159   : > { %v625_v7 = vmul.f32 %v624_v27, %v620_v43  ;;  %v618_v38 = vadd.f32 %v617_v32, %v605_v34  ;;  %v695_v55 = vmul.f32 %v1764_v50, %v690_v45 }
 0x15a   : > { %v698_v44 = vpop.permute.xlu0 %697 }
 0x15b   : > { %v630_v52 = vmul.f32 %v628_v6, %v625_v7  ;;  %v703_v37 = vmul.f32 %v1173_v36, %v698_v44 }
 0x15c   : > { %v659_v25 = vpop.permute.xlu1 %658 }
 0x15d   : > { %v631_v57 = vadd.f32 %v630_v52, %v618_v38  ;;  %v664_v31 = vmul.f32 %v663_v24, %v659_v25  ;;  %v708_v61 = vmul.f32 %v1762_v47, %v703_v37 }
 0x15f   : > { %v644_v59 = vadd.f32 %v643_v39, %v631_v57  ;;  %v669_v49 = vmul.f32 %v667_v1, %v664_v31 }
 0x160   : > { %v826_v10 = vpop.permute.xlu1 %825 }
 0x161   : > { %v657_v28 = vadd.f32 %v656_v41, %v644_v59  ;;  %v829_v33 = vsel %vm828_vm6, 0.0, %v826_v10 }
 0x162   : > { %v835_v11 = vmul.f32 %v829_v33, %v615_v4 }
 0x163   : > { %v670_v30 = vadd.f32 %v669_v49, %v657_v28 }
 0x164   : > { %v831_v53 = vpop.permute.xlu1 %830  ;;  %v837_v58 = vadd.f32 %v836_v51, %v835_v11 }
 0x165   : > { %v683_v56 = vadd.f32 %v682_v29, %v670_v30  ;;  %v834_v14 = vsel %vm833_vm5, %v831_v53, 0.0 }
 0x166   : > { %v838_v60 = vmul.f32 %v834_v14, %v641_v5 }
 0x167   : > { %v696_v0 = vadd.f32 %v695_v55, %v683_v56 }
 0x168   : > { %v839_v2 = vadd.f32 %v838_v60, %v837_v58  ;;  %v974_v50 = vpop.permute.xlu1 %973 }
 0x169   : > { %v709_v46 = vadd.f32 %v708_v61, %v696_v0 }
 0x16a   : > { %v844_v3 = vmul.f32 %v843_v62, %v839_v2 }
 0x16c   : > { %v963_v4 = vsel %vm962_vm7, %v844_v3, 0.0 }
 0x16d   : > { %v964_v9 = vadd.f32 %v963_v4, %v709_v46 }
 0x1b0   : > { %v967_v40 = vpop.permute.xlu0 %966 }
 0x1b1   : > { %v970_v6 = vsel %vm969_vm8, 0.0, %v967_v40 }
 0x1b2   : > { %v971_v16 = vadd.f32 %v970_v6, %v964_v9 }
 0x1b4   : > { %v976_v17 = vadd.f32 %v974_v50, %v971_v16 }
 0x1b6   : > { %v978_v8 = vrot.slane %v976_v17, 4  ;;  %985 = sbr.rel (%p1174_p1) target bundleno = 445 (0x1bd), region = 128 }
 0x1b8   : > { %v980_v47 = vmul.f32 %v978_v8, %v976_v17 }
 0x1ba   : > { %981 = vst [vmem:[%s509_s22] sm:$0xf] %v980_v47 }
 0x1bb   : > { %vm986_vm9 = vcmask 3072   ;;  %v1386_v5 = vmov 0.0  }
 0x1bc   : > { %987 = vst.msk [vmem:[%s1533_s25] sm:$0xf] %vm986_vm9, %v1386_v5 }
 0x1bd PF: > { %v989_v1 = vsel %vm520_vm4, %v980_v47, 0.0  ;;  %vm993_vm10 = vcmask 3072  }
 0x1be   : > { %990 = vadd.xlane.f32.xlu0 %v989_v1 }
 0x1c3   : > { %v988_v18 = vld [vmem:[%s1533_s25] sm:$0xf] }
 0x247   : > { %v991_v48 = vpop.xlane.xlu0 %990 }
 0x248   : > { %v992_v22 = vadd.f32 %v991_v48, %v988_v18 }
 0x24a   : > { %994 = vst.msk [vmem:[%s1533_s25] sm:$0xf] %vm993_vm10, %v992_v22 }
 0x24b PF: > { %s19_s13 = sadd.s32 1, %s1366_s13   ;;  %s1850_s17 = sld [smem:[#allocation4_spill]] }
 0x24c   : > { %p16_p2 = scmp.ge.s32.totalorder %s19_s13, 6   ;;  %s1851_s27 = smov %s1338_s28 }
 0x24d   : > { %s1852_s28 = smov %s1501_s21  ;;  %s1853_s29 = smov %s1346_s30 }
 0x24e   : > { %s1854_s30 = smov %s1491_s18  ;;  %s1855_s9 = smov %s1358_s11 }
 0x24f   : > { %s1856_s10 = smov %s1362_s12  ;;  %s1857_s11 = smov %s1860_s14 }
 0x250   :  { %18 = sbr.rel (!%p16_p2) target bundleno = 7 (0x7), region = 186 }
 0x251   : > { %s1858_s12 = smov %s1850_s17 }

</bundles_post_ra>
